<compile_context>
chip_gen: v6e
topology: v6e:2x2x1
jax: 0.10.0
libtpu: 0.0.40
codegen_flags: <defaults>
</compile_context>

<pallas_src>
import functools

import jax
import jax.numpy as jnp
from jax import lax
from jax.experimental import pallas as pl
from jax.experimental.pallas import tpu as pltpu


def _round_up(n, m):
    return (n + m - 1) // m * m


def _mlp_kernel(x_ref,
                w1_ref, b1_ref,
                w2_ref, b2_ref,
                w3_ref, b3_ref,
                w4_ref, b4_ref,
                o_ref,
                *, row_tile):
    """Fused 4-layer MLP: ReLU after layers 1-3, none after the last
    (matches nn.Sequential(*encoder_layers[:-1])).

    The batch block is processed in `row_tile`-row sub-tiles (unrolled fori_loop)
    so per-layer activations stay within the vreg file. Weight refs are read at
    each dot site (not hoisted) to avoid register spills across the unrolled body.
    """
    n_sub = x_ref.shape[0] // row_tile  # static

    def body(s, carry):
        r = pl.multiple_of(s * row_tile, row_tile)
        h = x_ref[pl.ds(r, row_tile), :]  # already bf16

        h = jnp.dot(h, w1_ref[...], preferred_element_type=jnp.float32) + b1_ref[...]
        h = jnp.maximum(h, 0.0).astype(jnp.bfloat16)

        h = jnp.dot(h, w2_ref[...], preferred_element_type=jnp.float32) + b2_ref[...]
        h = jnp.maximum(h, 0.0).astype(jnp.bfloat16)

        h = jnp.dot(h, w3_ref[...], preferred_element_type=jnp.float32) + b3_ref[...]
        h = jnp.maximum(h, 0.0).astype(jnp.bfloat16)

        h = jnp.dot(h, w4_ref[...], preferred_element_type=jnp.float32) + b4_ref[...]
        o_ref[pl.ds(r, row_tile), :] = h.astype(o_ref.dtype)
        return carry

    lax.fori_loop(0, n_sub, body, 0, unroll=True)


def prepare_params(params):
    """One-time preparation (keep OUTSIDE the per-step jitted forward):
    zero-pad every feature dim except the final output to a multiple of 128 and
    cast weights to bf16 at rest. Zero padding is exact: padded weight rows/cols
    and biases are 0 and ReLU(0)=0, so padded lanes stay 0 through the net."""
    dims = [params[0][0].shape[0]] + [w.shape[1] for (w, _) in params]
    dims_p = [_round_up(d, 128) for d in dims[:-1]] + [dims[-1]]  # last out dim NOT inflated
    prepped = []
    for li, (w, b) in enumerate(params):
        in_p, out_p = dims_p[li], dims_p[li + 1]
        w_p = jnp.pad(w, ((0, in_p - w.shape[0]), (0, out_p - w.shape[1]))).astype(jnp.bfloat16)
        b_p = jnp.pad(b, ((0, 0), (0, out_p - b.shape[1]))).astype(jnp.float32)
        prepped.append((w_p, b_p))
    return prepped


@functools.partial(jax.jit, static_argnames=("batch_tile",))
def embeddings_encoder_forward(x, params, *, batch_tile=1024):
    """x: (B, D_in), ideally bf16 (f32 accepted; cast fuses with the pad).
    params: output of prepare_params() — 4 (w_bf16, b_f32) pairs, w: (in_p, out_p)."""
    B, D_in = x.shape
    assert len(params) == 4, "kernel is specialized to the 4-Linear EmbeddingsEncoder"
    (w1, b1), (w2, b2), (w3, b3), (w4, b4) = params
    D_in_p = w1.shape[0]
    D_out = w4.shape[1]
    dims_p = (D_in_p, w1.shape[1], w2.shape[1], w3.shape[1], D_out)

    # bf16 at the kernel boundary; no standalone wrapper pass (fuses with the pad below).
    if x.dtype != jnp.bfloat16:
        x = x.astype(jnp.bfloat16)

    # ---- batch tile: multiple of 16 (bf16 sublane packing); multiple of 128 and
    # >= 2 grid steps when the batch allows it (megacore on v7x, bounded padding).
    B16 = _round_up(B, 16)
    if B16 <= 128:
        bt = B16
    else:
        half = _round_up(pl.cdiv(B16, 2), 128)
        bt = max(128, min(_round_up(batch_tile, 128), half))
    B_p = _round_up(B, bt)

    # Single fused pad for both batch rows and input lanes.
    x_p = jnp.pad(x, ((0, B_p - B), (0, D_in_p - D_in)))

    # 128-row sub-tiles keep per-layer activations within the vreg file.
    row_tile = 128 if (bt % 128 == 0) else bt

    # Constant-index blocks: single-buffered (double-buffering them wastes VMEM).
    const = lambda a: pl.BlockSpec(a.shape, lambda i: (0, 0), pipeline_mode=pl.Buffered(1))

    flops = 2 * B_p * sum(dims_p[i] * dims_p[i + 1] for i in range(4))
    bytes_accessed = (
        x_p.size * x_p.dtype.itemsize
        + B_p * D_out * 4
        + sum(w.size * w.dtype.itemsize + b.size * b.dtype.itemsize for (w, b) in params)
    )

    out = pl.pallas_call(
        functools.partial(_mlp_kernel, row_tile=row_tile),
        out_shape=jax.ShapeDtypeStruct((B_p, D_out), jnp.float32),
        grid_spec=pltpu.PrefetchScalarGridSpec(
            num_scalar_prefetch=0,
            grid=(B_p // bt,),
            in_specs=[
                pl.BlockSpec((bt, D_in_p), lambda i: (i, 0)),
                const(w1), const(b1),
                const(w2), const(b2),
                const(w3), const(b3),
                const(w4), const(b4),
            ],
            out_specs=pl.BlockSpec((bt, D_out), lambda i: (i, 0)),
        ),
        compiler_params=pltpu.CompilerParams(
            dimension_semantics=("parallel",),
            vmem_limit_bytes=48 * 1024 * 1024,   # v7x-safe (64 MiB physical)
        ),
        cost_estimate=pl.CostEstimate(
            flops=flops, transcendentals=0, bytes_accessed=bytes_accessed),
    )(x_p, w1, b1, w2, b2, w3, b3, w4, b4)

    # Only the batch padding is sliced away (output lanes were never inflated).
    return out[:B]


def init_params(key, input_dim, hidden_dims):
    """Deterministic init mirroring nn.Linear default (U[-1/sqrt(fan_in), 1/sqrt(fan_in)]).
    Weights stored transposed: (in, out)."""
    params = []
    prev = input_dim
    for h in hidden_dims:
        key, kw, kb = jax.random.split(key, 3)
        bound = 1.0 / jnp.sqrt(prev)
        w = jax.random.uniform(kw, (prev, h), jnp.float32, -bound, bound)
        b = jax.random.uniform(kb, (1, h), jnp.float32, -bound, bound)
        params.append((w, b))
        prev = h
    return params


def reference_forward(x, params):
    """Pure-JAX f32 reference matching the PyTorch module forward."""
    h = x
    n = len(params)
    for idx, (w, b) in enumerate(params):
        h = h @ w + b
        if idx != n - 1:
            h = jnp.maximum(h, 0.0)
    return h


if __name__ == "__main__":
    # Small shapes mirroring the module structure (4 Linear layers, last one no ReLU),
    # with ragged dims/batch to exercise padding, multi-step grid and sub-tiling.
    input_dim = 200
    hidden_dims = [100, 100, 250, 10]
    batch = 300

    key = jax.random.PRNGKey(0)
    key, kx = jax.random.split(key)
    # Upstream producer emits bf16 (no standalone cast inside the forward).
    x = jax.random.normal(kx, (batch, input_dim), jnp.float32).astype(jnp.bfloat16)
    params_f32 = init_params(key, input_dim, hidden_dims)

    # One-time param prep (padding + bf16 cast) outside the per-call jit.
    params = prepare_params(params_f32)

    out = embeddings_encoder_forward(x, params)
    out = jax.block_until_ready(out)

    # Reference in f32 math on the same bf16-quantized inputs/weights, so the
    # comparison isolates the kernel's intermediate bf16 rounding.
    x_ref = x.astype(jnp.float32)
    params_ref = [(w.astype(jnp.bfloat16).astype(jnp.float32), b) for (w, b) in params_f32]
    ref = reference_forward(x_ref, params_ref)

    assert out.shape == (batch, hidden_dims[-1])
    max_err = float(jnp.max(jnp.abs(out - ref)))
    assert jnp.allclose(out, ref, atol=2e-2, rtol=2e-2), f"mismatch vs reference, max abs err={max_err}"

    print("KERNEL_OK")
</pallas_src>

<mosaic_0001>
module attributes {stable_mosaic.version = 11 : i64} {
  func.func @_mlp_kernel(%arg0: i32, %arg1: memref<256x256xbf16, #tpu.memory_space<vmem>>, %arg2: memref<256x128xbf16, #tpu.memory_space<vmem>>, %arg3: memref<1x128xf32, #tpu.memory_space<vmem>>, %arg4: memref<128x128xbf16, #tpu.memory_space<vmem>>, %arg5: memref<1x128xf32, #tpu.memory_space<vmem>>, %arg6: memref<128x256xbf16, #tpu.memory_space<vmem>>, %arg7: memref<1x256xf32, #tpu.memory_space<vmem>>, %arg8: memref<256x10xbf16, #tpu.memory_space<vmem>>, %arg9: memref<1x10xf32, #tpu.memory_space<vmem>>, %arg10: memref<256x10xf32, #tpu.memory_space<vmem>>) attributes {dimension_semantics = [#tpu.dimension_semantics<parallel>], iteration_bounds = array<i64: 2>, scalar_prefetch = 0 : i64, scratch_operands = 0 : i64, tpu.core_type = #tpu.core_type<tc>, window_params = [{transform_indices = @transform_0, window_bounds = array<i64: 256, 256>}, {pipeline_mode = #tpu.pipeline_mode<synchronous>, transform_indices = @transform_1, window_bounds = array<i64: 256, 128>}, {pipeline_mode = #tpu.pipeline_mode<synchronous>, transform_indices = @transform_2, window_bounds = array<i64: 1, 128>}, {pipeline_mode = #tpu.pipeline_mode<synchronous>, transform_indices = @transform_3, window_bounds = array<i64: 128, 128>}, {pipeline_mode = #tpu.pipeline_mode<synchronous>, transform_indices = @transform_4, window_bounds = array<i64: 1, 128>}, {pipeline_mode = #tpu.pipeline_mode<synchronous>, transform_indices = @transform_5, window_bounds = array<i64: 128, 256>}, {pipeline_mode = #tpu.pipeline_mode<synchronous>, transform_indices = @transform_6, window_bounds = array<i64: 1, 256>}, {pipeline_mode = #tpu.pipeline_mode<synchronous>, transform_indices = @transform_7, window_bounds = array<i64: 256, 10>}, {pipeline_mode = #tpu.pipeline_mode<synchronous>, transform_indices = @transform_8, window_bounds = array<i64: 1, 10>}, {transform_indices = @transform_9, window_bounds = array<i64: 256, 10>}]} {
    %c0_i32 = arith.constant 0 : i32
    %c128_i32 = arith.constant 128 : i32
    %0 = arith.muli %c0_i32, %c128_i32 : i32
    %1 = tpu.assume_multiple %0, 128 : i32
    %2 = arith.index_cast %1 : i32 to index
    %c0 = arith.constant 0 : index
    %3 = vector.load %arg1[%2, %c0] : memref<256x256xbf16, #tpu.memory_space<vmem>>, vector<128x256xbf16>
    %c0_0 = arith.constant 0 : index
    %c0_1 = arith.constant 0 : index
    %4 = vector.load %arg2[%c0_0, %c0_1] : memref<256x128xbf16, #tpu.memory_space<vmem>>, vector<256x128xbf16>
    %cst = arith.constant dense<0.000000e+00> : vector<128x128xf32>
    %5 = tpu.matmul %3, %4, %cst {dimension_numbers = #tpu.dot_dimension_numbers<[1], [0], [0], [1], [0, 0, 1, 1], [], []>} : vector<128x256xbf16>, vector<256x128xbf16>, vector<128x128xf32> -> vector<128x128xf32>
    %c0_2 = arith.constant 0 : index
    %c0_3 = arith.constant 0 : index
    %6 = vector.load %arg3[%c0_2, %c0_3] : memref<1x128xf32, #tpu.memory_space<vmem>>, vector<1x128xf32>
    %7 = vector.broadcast %6 : vector<1x128xf32> to vector<128x128xf32>
    %8 = arith.addf %5, %7 : vector<128x128xf32>
    %cst_4 = arith.constant 0.000000e+00 : f32
    %9 = vector.broadcast %cst_4 : f32 to vector<128x128xf32>
    %10 = arith.maximumf %8, %9 : vector<128x128xf32>
    %11 = arith.truncf %10 : vector<128x128xf32> to vector<128x128xbf16>
    %c0_5 = arith.constant 0 : index
    %c0_6 = arith.constant 0 : index
    %12 = vector.load %arg4[%c0_5, %c0_6] : memref<128x128xbf16, #tpu.memory_space<vmem>>, vector<128x128xbf16>
    %cst_7 = arith.constant dense<0.000000e+00> : vector<128x128xf32>
    %13 = tpu.matmul %11, %12, %cst_7 {dimension_numbers = #tpu.dot_dimension_numbers<[1], [0], [0], [1], [0, 0, 1, 1], [], []>} : vector<128x128xbf16>, vector<128x128xbf16>, vector<128x128xf32> -> vector<128x128xf32>
    %c0_8 = arith.constant 0 : index
    %c0_9 = arith.constant 0 : index
    %14 = vector.load %arg5[%c0_8, %c0_9] : memref<1x128xf32, #tpu.memory_space<vmem>>, vector<1x128xf32>
    %15 = vector.broadcast %14 : vector<1x128xf32> to vector<128x128xf32>
    %16 = arith.addf %13, %15 : vector<128x128xf32>
    %cst_10 = arith.constant 0.000000e+00 : f32
    %17 = vector.broadcast %cst_10 : f32 to vector<128x128xf32>
    %18 = arith.maximumf %16, %17 : vector<128x128xf32>
    %19 = arith.truncf %18 : vector<128x128xf32> to vector<128x128xbf16>
    %c0_11 = arith.constant 0 : index
    %c0_12 = arith.constant 0 : index
    %20 = vector.load %arg6[%c0_11, %c0_12] : memref<128x256xbf16, #tpu.memory_space<vmem>>, vector<128x256xbf16>
    %cst_13 = arith.constant dense<0.000000e+00> : vector<128x256xf32>
    %21 = tpu.matmul %19, %20, %cst_13 {dimension_numbers = #tpu.dot_dimension_numbers<[1], [0], [0], [1], [0, 0, 1, 1], [], []>} : vector<128x128xbf16>, vector<128x256xbf16>, vector<128x256xf32> -> vector<128x256xf32>
    %c0_14 = arith.constant 0 : index
    %c0_15 = arith.constant 0 : index
    %22 = vector.load %arg7[%c0_14, %c0_15] : memref<1x256xf32, #tpu.memory_space<vmem>>, vector<1x256xf32>
    %23 = vector.broadcast %22 : vector<1x256xf32> to vector<128x256xf32>
    %24 = arith.addf %21, %23 : vector<128x256xf32>
    %cst_16 = arith.constant 0.000000e+00 : f32
    %25 = vector.broadcast %cst_16 : f32 to vector<128x256xf32>
    %26 = arith.maximumf %24, %25 : vector<128x256xf32>
    %27 = arith.truncf %26 : vector<128x256xf32> to vector<128x256xbf16>
    %c0_17 = arith.constant 0 : index
    %c0_18 = arith.constant 0 : index
    %28 = vector.load %arg8[%c0_17, %c0_18] : memref<256x10xbf16, #tpu.memory_space<vmem>>, vector<256x10xbf16>
    %cst_19 = arith.constant dense<0.000000e+00> : vector<128x10xf32>
    %29 = tpu.matmul %27, %28, %cst_19 {dimension_numbers = #tpu.dot_dimension_numbers<[1], [0], [0], [1], [0, 0, 1, 1], [], []>} : vector<128x256xbf16>, vector<256x10xbf16>, vector<128x10xf32> -> vector<128x10xf32>
    %c0_20 = arith.constant 0 : index
    %c0_21 = arith.constant 0 : index
    %30 = vector.load %arg9[%c0_20, %c0_21] : memref<1x10xf32, #tpu.memory_space<vmem>>, vector<1x10xf32>
    %31 = vector.broadcast %30 : vector<1x10xf32> to vector<128x10xf32>
    %32 = arith.addf %29, %31 : vector<128x10xf32>
    %33 = arith.index_cast %1 : i32 to index
    %c0_22 = arith.constant 0 : index
    %34 = vector.load %arg10[%33, %c0_22] : memref<256x10xf32, #tpu.memory_space<vmem>>, vector<128x10xf32>
    tpu.vector_store %arg10[%33, %c0_22], %32 {strides = array<i32>} : memref<256x10xf32, #tpu.memory_space<vmem>>, vector<128x10xf32>,
    %c1_i32 = arith.constant 1 : i32
    %c128_i32_23 = arith.constant 128 : i32
    %35 = arith.muli %c1_i32, %c128_i32_23 : i32
    %36 = tpu.assume_multiple %35, 128 : i32
    %37 = arith.index_cast %36 : i32 to index
    %c0_24 = arith.constant 0 : index
    %38 = vector.load %arg1[%37, %c0_24] : memref<256x256xbf16, #tpu.memory_space<vmem>>, vector<128x256xbf16>
    %c0_25 = arith.constant 0 : index
    %c0_26 = arith.constant 0 : index
    %39 = vector.load %arg2[%c0_25, %c0_26] : memref<256x128xbf16, #tpu.memory_space<vmem>>, vector<256x128xbf16>
    %cst_27 = arith.constant dense<0.000000e+00> : vector<128x128xf32>
    %40 = tpu.matmul %38, %39, %cst_27 {dimension_numbers = #tpu.dot_dimension_numbers<[1], [0], [0], [1], [0, 0, 1, 1], [], []>} : vector<128x256xbf16>, vector<256x128xbf16>, vector<128x128xf32> -> vector<128x128xf32>
    %c0_28 = arith.constant 0 : index
    %c0_29 = arith.constant 0 : index
    %41 = vector.load %arg3[%c0_28, %c0_29] : memref<1x128xf32, #tpu.memory_space<vmem>>, vector<1x128xf32>
    %42 = vector.broadcast %41 : vector<1x128xf32> to vector<128x128xf32>
    %43 = arith.addf %40, %42 : vector<128x128xf32>
    %cst_30 = arith.constant 0.000000e+00 : f32
    %44 = vector.broadcast %cst_30 : f32 to vector<128x128xf32>
    %45 = arith.maximumf %43, %44 : vector<128x128xf32>
    %46 = arith.truncf %45 : vector<128x128xf32> to vector<128x128xbf16>
    %c0_31 = arith.constant 0 : index
    %c0_32 = arith.constant 0 : index
    %47 = vector.load %arg4[%c0_31, %c0_32] : memref<128x128xbf16, #tpu.memory_space<vmem>>, vector<128x128xbf16>
    %cst_33 = arith.constant dense<0.000000e+00> : vector<128x128xf32>
    %48 = tpu.matmul %46, %47, %cst_33 {dimension_numbers = #tpu.dot_dimension_numbers<[1], [0], [0], [1], [0, 0, 1, 1], [], []>} : vector<128x128xbf16>, vector<128x128xbf16>, vector<128x128xf32> -> vector<128x128xf32>
    %c0_34 = arith.constant 0 : index
    %c0_35 = arith.constant 0 : index
    %49 = vector.load %arg5[%c0_34, %c0_35] : memref<1x128xf32, #tpu.memory_space<vmem>>, vector<1x128xf32>
    %50 = vector.broadcast %49 : vector<1x128xf32> to vector<128x128xf32>
    %51 = arith.addf %48, %50 : vector<128x128xf32>
    %cst_36 = arith.constant 0.000000e+00 : f32
    %52 = vector.broadcast %cst_36 : f32 to vector<128x128xf32>
    %53 = arith.maximumf %51, %52 : vector<128x128xf32>
    %54 = arith.truncf %53 : vector<128x128xf32> to vector<128x128xbf16>
    %c0_37 = arith.constant 0 : index
    %c0_38 = arith.constant 0 : index
    %55 = vector.load %arg6[%c0_37, %c0_38] : memref<128x256xbf16, #tpu.memory_space<vmem>>, vector<128x256xbf16>
    %cst_39 = arith.constant dense<0.000000e+00> : vector<128x256xf32>
    %56 = tpu.matmul %54, %55, %cst_39 {dimension_numbers = #tpu.dot_dimension_numbers<[1], [0], [0], [1], [0, 0, 1, 1], [], []>} : vector<128x128xbf16>, vector<128x256xbf16>, vector<128x256xf32> -> vector<128x256xf32>
    %c0_40 = arith.constant 0 : index
    %c0_41 = arith.constant 0 : index
    %57 = vector.load %arg7[%c0_40, %c0_41] : memref<1x256xf32, #tpu.memory_space<vmem>>, vector<1x256xf32>
    %58 = vector.broadcast %57 : vector<1x256xf32> to vector<128x256xf32>
    %59 = arith.addf %56, %58 : vector<128x256xf32>
    %cst_42 = arith.constant 0.000000e+00 : f32
    %60 = vector.broadcast %cst_42 : f32 to vector<128x256xf32>
    %61 = arith.maximumf %59, %60 : vector<128x256xf32>
    %62 = arith.truncf %61 : vector<128x256xf32> to vector<128x256xbf16>
    %c0_43 = arith.constant 0 : index
    %c0_44 = arith.constant 0 : index
    %63 = vector.load %arg8[%c0_43, %c0_44] : memref<256x10xbf16, #tpu.memory_space<vmem>>, vector<256x10xbf16>
    %cst_45 = arith.constant dense<0.000000e+00> : vector<128x10xf32>
    %64 = tpu.matmul %62, %63, %cst_45 {dimension_numbers = #tpu.dot_dimension_numbers<[1], [0], [0], [1], [0, 0, 1, 1], [], []>} : vector<128x256xbf16>, vector<256x10xbf16>, vector<128x10xf32> -> vector<128x10xf32>
    %c0_46 = arith.constant 0 : index
    %c0_47 = arith.constant 0 : index
    %65 = vector.load %arg9[%c0_46, %c0_47] : memref<1x10xf32, #tpu.memory_space<vmem>>, vector<1x10xf32>
    %66 = vector.broadcast %65 : vector<1x10xf32> to vector<128x10xf32>
    %67 = arith.addf %64, %66 : vector<128x10xf32>
    %68 = arith.index_cast %36 : i32 to index
    %c0_48 = arith.constant 0 : index
    %69 = vector.load %arg10[%68, %c0_48] : memref<256x10xf32, #tpu.memory_space<vmem>>, vector<128x10xf32>
    tpu.vector_store %arg10[%68, %c0_48], %67 {strides = array<i32>} : memref<256x10xf32, #tpu.memory_space<vmem>>, vector<128x10xf32>,
    %c2_i32 = arith.constant 2 : i32
    return
  }
  func.func @transform_0(%arg0: i32) -> (i32, i32) {
    %c0_i32 = arith.constant 0 : i32
    %c0_i32_0 = arith.constant 0 : i32
    return %arg0, %c0_i32 : i32, i32
  }
  func.func @transform_1(%arg0: i32) -> (i32, i32) {
    %c0_i32 = arith.constant 0 : i32
    %c0_i32_0 = arith.constant 0 : i32
    %c0_i32_1 = arith.constant 0 : i32
    return %c0_i32, %c0_i32_0 : i32, i32
  }
  func.func @transform_2(%arg0: i32) -> (i32, i32) {
    %c0_i32 = arith.constant 0 : i32
    %c0_i32_0 = arith.constant 0 : i32
    %c0_i32_1 = arith.constant 0 : i32
    return %c0_i32, %c0_i32_0 : i32, i32
  }
  func.func @transform_3(%arg0: i32) -> (i32, i32) {
    %c0_i32 = arith.constant 0 : i32
    %c0_i32_0 = arith.constant 0 : i32
    %c0_i32_1 = arith.constant 0 : i32
    return %c0_i32, %c0_i32_0 : i32, i32
  }
  func.func @transform_4(%arg0: i32) -> (i32, i32) {
    %c0_i32 = arith.constant 0 : i32
    %c0_i32_0 = arith.constant 0 : i32
    %c0_i32_1 = arith.constant 0 : i32
    return %c0_i32, %c0_i32_0 : i32, i32
  }
  func.func @transform_5(%arg0: i32) -> (i32, i32) {
    %c0_i32 = arith.constant 0 : i32
    %c0_i32_0 = arith.constant 0 : i32
    %c0_i32_1 = arith.constant 0 : i32
    return %c0_i32, %c0_i32_0 : i32, i32
  }
  func.func @transform_6(%arg0: i32) -> (i32, i32) {
    %c0_i32 = arith.constant 0 : i32
    %c0_i32_0 = arith.constant 0 : i32
    %c0_i32_1 = arith.constant 0 : i32
    return %c0_i32, %c0_i32_0 : i32, i32
  }
  func.func @transform_7(%arg0: i32) -> (i32, i32) {
    %c0_i32 = arith.constant 0 : i32
    %c0_i32_0 = arith.constant 0 : i32
    %c0_i32_1 = arith.constant 0 : i32
    return %c0_i32, %c0_i32_0 : i32, i32
  }
  func.func @transform_8(%arg0: i32) -> (i32, i32) {
    %c0_i32 = arith.constant 0 : i32
    %c0_i32_0 = arith.constant 0 : i32
    %c0_i32_1 = arith.constant 0 : i32
    return %c0_i32, %c0_i32_0 : i32, i32
  }
  func.func @transform_9(%arg0: i32) -> (i32, i32) {
    %c0_i32 = arith.constant 0 : i32
    %c0_i32_0 = arith.constant 0 : i32
    return %arg0, %c0_i32 : i32, i32
  }
}

</mosaic_0001>

<bundles_post_ra>
// kernel: embeddings_encoder_forward.1
= control target key start
LH: loop header
LB: loop body
LE: loop exit
PB: predicated region body
PF: predicated region fallthrough
CT: control target
= control target key end

     0   :  { %s3318_s30 = smov 0   ;;  %s4005_s0 = inlined_call_operand.vmem [shape: bf16[512,256], index: 0, kind: input, shape index: {}]   ;;  %s4006_s1 = inlined_call_operand.vmem [shape: bf16[256,128], index: 1, kind: input, shape index: {}]   ;;  %s4007_s2 = inlined_call_operand.vmem [shape: f32[1,128], index: 2, kind: input, shape index: {}]   ;;  %s4008_s3 = inlined_call_operand.vmem [shape: bf16[128,128], index: 3, kind: input, shape index: {}]   ;;  %s4009_s4 = inlined_call_operand.vmem [shape: f32[1,128], index: 4, kind: input, shape index: {}]   ;;  %s4010_s5 = inlined_call_operand.vmem [shape: bf16[128,256], index: 5, kind: input, shape index: {}]   ;;  %s4011_s6 = inlined_call_operand.vmem [shape: f32[1,256], index: 6, kind: input, shape index: {}]   ;;  %s4012_s7 = inlined_call_operand.vmem [shape: bf16[256,10], index: 7, kind: input, shape index: {}]   ;;  %s4013_s8 = inlined_call_operand.vmem [shape: f32[1,10], index: 8, kind: input, shape index: {}]   ;;  %s4014_s9 = inlined_call_operand.vmem [shape: f32[512,10], index: 9, kind: output, shape index: {}]  }
   0x1 LB: > { %s2527_s10 = sadd.s32 4294967295, %s3265_s30   ;;  %p2531_p0 = scmp.ge.s32.totalorder %s3265_s30, 1  ;;  %s3265_s30 = sphi %s3318_s30, %s19_s30  }
   0x2   : > { %p289_p1 = scmp.lt.s32.totalorder %s3265_s30, 3 }
   0x4   : > { %p290_p2 = pnand %p2531_p0, %p289_p1 }
   0x5   : > { %s2532_s13 = sshll.u32 (!%p290_p2), %s2527_s10, 5 }
   0x6   : > { %293 = sbr.rel (%p290_p2) target bundleno = 1414 (0x586), region = 56  ;;  %p327_p3 = scmp.lt.s32.totalorder (!%p290_p2), %s2532_s13, 63 }
   0xb   : > { %v3083_v0 = vld [vmem:[%s4006_s1 + $0x78] sm:$0xff]   ;;  %v3085_v2 = vld [vmem:[%s4006_s1 + $0x70] sm:$0xff]   ;;  %v3087_v4 = vld [vmem:[%s4006_s1 + $0x68] sm:$0xff]   ;;  %s4016_s13 = smov (!%p327_p3, %s2532_s13), 63  ;;  %vm1388_vm0 = vcmask 80896  }
   0xc   : > { %v3084_v1 = vld [vmem:[%s4006_s1 + $0x38] sm:$0xff]   ;;  %2722 = vmatprep.subr.bf16.mxu0 %v3083_v0  ;;  %v3086_v3 = vld [vmem:[%s4006_s1 + $0x30] sm:$0xff]   ;;  %v3088_v5 = vld [vmem:[%s4006_s1 + $0x28] sm:$0xff]   ;;  %s2721_s28 = sshll.u32 %s4016_s13, 3 }
   0xd   : > { %2723 = vmatpush3.bf16.msra.mxu0 %v3084_v1  ;;  %v3089_v6 = vld [vmem:[%s4006_s1 + $0x60] sm:$0xff]   ;;  %v3091_v8 = vld [vmem:[%s4006_s1 + $0x58] sm:$0xff]   ;;  %s3361_s14 = scalar_lea.vmem %s4005_s0, %s2721_s28  ;;  %v3093_v10 = vld [vmem:[%s4006_s1 + $0x50] sm:$0xff]   ;;  %s3785_s29 = scalar_lea.vmem %s4014_s9, %s2721_s28 }
   0xe   : > { %2724 = vmatprep.subr.bf16.mxu0 %v3085_v2  ;;  %v3090_v7 = vld [vmem:[%s4006_s1 + $0x20] sm:$0xff]   ;;  %v3092_v9 = vld [vmem:[%s4006_s1 + $0x18] sm:$0xff]   ;;  %v3094_v12 = vld [vmem:[%s4006_s1 + $0x10] sm:$0xff]  }
   0xf   : > { %v3101_v11 = vld [vmem:[%s3361_s14 + $0x4] ss:$8 sps:$4 sm:$0xff]   ;;  %v3123_v17 = vld [vmem:[%s4008_s3 + $0x38] sm:$0xff]   ;;  %v3099_v18 = vld [vmem:[%s3361_s14] ss:$8 sps:$4 sm:$0xff]  }
  0x10   : > { %606 = vmatprep.mubr.bf16.mxu0 %v3101_v11  ;;  %v3095_v13 = vld [vmem:[%s4006_s1 + $0x48] sm:$0xff]   ;;  %v3097_v15 = vld [vmem:[%s4006_s1 + $0x40] sm:$0xff]   ;;  %v3124_v19 = vld [vmem:[%s4008_s3 + $0x30] sm:$0xff]   ;;  %3010 = vmatprep.subr.bf16.mxu1 %v3123_v17 }
  0x11   : > { %2725 = vmatpush3.bf16.msra.mxu0 %v3086_v3  ;;  %v3096_v14 = vld [vmem:[%s4006_s1 + $0x8] sm:$0xff]   ;;  %v3098_v16 = vld [vmem:[%s4006_s1] sm:$0xff]   ;;  %v3102_v20 = vld [vmem:[%s3361_s14 + $0x14] ss:$8 sps:$4 sm:$0xff]   ;;  %3011 = vmatpush3.bf16.msra.mxu1 %v3123_v17 }
  0x12   : > { %2726 = vmatprep.subr.bf16.mxu0 %v3087_v4  ;;  %v3125_v21 = vld [vmem:[%s4008_s3 + $0x28] sm:$0xff]   ;;  %3012 = vmatprep.subr.bf16.mxu1 %v3124_v19  ;;  %v3104_v22 = vld [vmem:[%s3361_s14 + $0x10] ss:$8 sps:$4 sm:$0xff]   ;;  %v3108_v25 = vld [vmem:[%s3361_s14 + $0x34] ss:$8 sps:$4 sm:$0xff]  }
  0x13   : > { %v3105_v23 = vld [vmem:[%s3361_s14 + $0x24] ss:$8 sps:$4 sm:$0xff]   ;;  %v3107_v24 = vld [vmem:[%s3361_s14 + $0x20] ss:$8 sps:$4 sm:$0xff]   ;;  %v3110_v26 = vld [vmem:[%s3361_s14 + $0x30] ss:$8 sps:$4 sm:$0xff]  }
  0x14   : > { %v3111_v27 = vld [vmem:[%s3361_s14 + $0x44] ss:$8 sps:$4 sm:$0xff]   ;;  %v3113_v28 = vld [vmem:[%s3361_s14 + $0x40] ss:$8 sps:$4 sm:$0xff]   ;;  %v3114_v29 = vld [vmem:[%s3361_s14 + $0x54] ss:$8 sps:$4 sm:$0xff]  }
  0x15   : > { %2727 = vmatpush3.bf16.msra.mxu0 %v3088_v5  ;;  %3013 = vmatpush3.bf16.msra.mxu1 %v3124_v19  ;;  %v3116_v30 = vld [vmem:[%s3361_s14 + $0x50] ss:$8 sps:$4 sm:$0xff]   ;;  %v3117_v31 = vld [vmem:[%s3361_s14 + $0x64] ss:$8 sps:$4 sm:$0xff]   ;;  %v3119_v32 = vld [vmem:[%s3361_s14 + $0x60] ss:$8 sps:$4 sm:$0xff]  }
  0x16   : > { %2728 = vmatprep.subr.bf16.mxu0 %v3089_v6  ;;  %3014 = vmatprep.subr.bf16.mxu1 %v3125_v21  ;;  %v3120_v33 = vld [vmem:[%s3361_s14 + $0x74] ss:$8 sps:$4 sm:$0xff]   ;;  %v3122_v34 = vld [vmem:[%s3361_s14 + $0x70] ss:$8 sps:$4 sm:$0xff]   ;;  %v3126_v35 = vld [vmem:[%s4008_s3 + $0x20] sm:$0xff]  }
  0x17   : > { %v3127_v36 = vld [vmem:[%s4008_s3 + $0x18] sm:$0xff]   ;;  %v3128_v37 = vld [vmem:[%s4008_s3 + $0x10] sm:$0xff]   ;;  %v3129_v38 = vld [vmem:[%s4008_s3 + $0x8] sm:$0xff]  }
  0x18   : > { %v3130_v39 = vld [vmem:[%s4008_s3] sm:$0xff]   ;;  %v3133_v40 = vld [vmem:[%s4010_s5 + $0x74] ss:$8 sps:$4 sm:$0xff]   ;;  %v3131_v3 = vld [vmem:[%s4010_s5 + $0x70] ss:$8 sps:$4 sm:$0xff]  }
  0x19   : > { %2729 = vmatpush3.bf16.msra.mxu0 %v3090_v7  ;;  %3015 = vmatpush3.bf16.msra.mxu1 %v3125_v21  ;;  %v3430_v45 = vld [vmem:[%s4007_s2] ss:$0 sm:$0xff]  ;;  %v3136_v5 = vld [vmem:[%s4010_s5 + $0x64] ss:$8 sps:$4 sm:$0xff]  }
  0x1a   : > { %2730 = vmatprep.subr.bf16.mxu0 %v3091_v8  ;;  %3016 = vmatprep.subr.bf16.mxu1 %v3126_v35 }
  0x1d   : > { %2731 = vmatpush3.bf16.msra.mxu0 %v3092_v9  ;;  %3017 = vmatpush3.bf16.msra.mxu1 %v3126_v35 }
  0x1e   : > { %2732 = vmatprep.subr.bf16.mxu0 %v3093_v10  ;;  %3018 = vmatprep.subr.bf16.mxu1 %v3127_v36  ;;  %v3134_v10 = vld [vmem:[%s4010_s5 + $0x60] ss:$8 sps:$4 sm:$0xff]  }
  0x21   : > { %2733 = vmatpush3.bf16.msra.mxu0 %v3094_v12  ;;  %3019 = vmatpush3.bf16.msra.mxu1 %v3127_v36  ;;  %v3139_v12 = vld [vmem:[%s4010_s5 + $0x54] ss:$8 sps:$4 sm:$0xff]  }
  0x22   : > { %2734 = vmatprep.subr.bf16.mxu0 %v3095_v13  ;;  %3020 = vmatprep.subr.bf16.mxu1 %v3128_v37 }
  0x25   : > { %2735 = vmatpush3.bf16.msra.mxu0 %v3096_v14  ;;  %3021 = vmatpush3.bf16.msra.mxu1 %v3128_v37 }
  0x26   : > { %2736 = vmatprep.subr.bf16.mxu0 %v3097_v15  ;;  %3022 = vmatprep.subr.bf16.mxu1 %v3129_v38 }
  0x29   : > { %2737 = vmatpush3.bf16.msra.mxu0 %v3098_v16  ;;  %3023 = vmatpush3.bf16.msra.mxu1 %v3129_v38 }
  0x2a   : > { %3024 = vmatprep.subr.bf16.mxu1 %v3130_v39 }
  0x2c   : > { %607 = vmatmul.mubr.bf16.vlgmr.msra.gmra.mxu0 %v3099_v18  ;;  %v3137_v18 = vld [vmem:[%s4010_s5 + $0x50] ss:$8 sps:$4 sm:$0xff]  }
  0x2d   : > { %614 = vmatprep.mubr.bf16.mxu0 %v3102_v20  ;;  %3025 = vmatpush3.bf16.msra.mxu1 %v3130_v39  ;;  %v3142_v20 = vld [vmem:[%s4010_s5 + $0x44] ss:$8 sps:$4 sm:$0xff]  }
  0x2e   : > { %995 = vmatprep.subr.bf16.mxu1 %v3133_v40 }
  0x34   : > { %615 = vmatmul.mubr.bf16.gmra.mxu0 %v3104_v22 }
  0x35   : > { %622 = vmatprep.mubr.bf16.mxu0 %v3105_v23 }
  0x3c   : > { %623 = vmatmul.mubr.bf16.gmra.mxu0 %v3107_v24 }
  0x3d   : > { %630 = vmatprep.mubr.bf16.mxu0 %v3108_v25  ;;  %v3140_v25 = vld [vmem:[%s4010_s5 + $0x40] ss:$8 sps:$4 sm:$0xff]  }
  0x44   : > { %631 = vmatmul.mubr.bf16.gmra.mxu0 %v3110_v26 }
  0x45   : > { %638 = vmatprep.mubr.bf16.mxu0 %v3111_v27  ;;  %v3145_v27 = vld [vmem:[%s4010_s5 + $0x34] ss:$8 sps:$4 sm:$0xff]  }
  0x4c   : > { %639 = vmatmul.mubr.bf16.gmra.mxu0 %v3113_v28 }
  0x4d   : > { %646 = vmatprep.mubr.bf16.mxu0 %v3114_v29 }
  0x54   : > { %647 = vmatmul.mubr.bf16.gmra.mxu0 %v3116_v30 }
  0x55   : > { %654 = vmatprep.mubr.bf16.mxu0 %v3117_v31 }
  0x5c   : > { %655 = vmatmul.mubr.bf16.gmra.mxu0 %v3119_v32 }
  0x5d   : > { %662 = vmatprep.mubr.bf16.mxu0 %v3120_v33  ;;  %v3143_v33 = vld [vmem:[%s4010_s5 + $0x30] ss:$8 sps:$4 sm:$0xff]  }
  0x64   : > { %663 = vmatmul.mubr.bf16.gmra.mxu0 %v3122_v34 }
  0xec   : > { %v2738_v41 = vpop.f32.mrf.mxu0 }
  0xee   : > { %v2739_v42 = vpop.f32.mrf.mxu0 }
  0xef   : > { %v2740_v43 = vadd.f32 %v2739_v42, %v2738_v41 }
  0xf0   : > { %v2741_v44 = vpop.f32.mrf.mxu0 }
  0xf1   : > { %v609_v48 = vadd.f32 %v2740_v43, %v3430_v45 }
  0xf2   : > { %v2742_v46 = vpop.f32.mrf.mxu0 }
  0xf3   : > { %v2743_v47 = vadd.f32 %v2742_v46, %v2741_v44  ;;  %v671_v53 = vmax.f32 %v609_v48, 0.0 }
  0xf4   : > { %v2744_v49 = vpop.f32.mrf.mxu0 }
  0xf5   : > { %v612_v50 = vadd.f32 %v2743_v47, %v3430_v45 }
  0xf6   : > { %v2745_v51 = vpop.f32.mrf.mxu0 }
  0xf7   : > { %v2746_v52 = vadd.f32 %v2745_v51, %v2744_v49  ;;  %v672_v54 = vmax.f32 %v612_v50, 0.0 }
  0xf8   : > { %v2747_v55 = vpop.f32.mrf.mxu0 }
  0xf9   : > { %v687_v56 = vpack.c.bf16 %v672_v54, %v671_v53  ;;  %v617_v58 = vadd.f32 %v2746_v52, %v3430_v45 }
  0xfa   : > { %v2748_v57 = vpop.f32.mrf.mxu0 }
  0xfb   : > { %v2749_v59 = vadd.f32 %v2748_v57, %v2747_v55  ;;  %3026 = vmatprep.mubr.bf16.mxu1 %v687_v56  ;;  %v673_v63 = vmax.f32 %v617_v58, 0.0 }
  0xfc   : > { %v2750_v60 = vpop.f32.mrf.mxu0 }
  0xfd   : > { %v620_v61 = vadd.f32 %v2749_v59, %v3430_v45 }
  0xfe   : > { %v2751_v62 = vpop.f32.mrf.mxu0 }
  0xff   : > { %v674_v0 = vmax.f32 %v620_v61, 0.0  ;;  %v2752_v1 = vadd.f32 %v2751_v62, %v2750_v60 }
 0x100   : > { %v2753_v2 = vpop.f32.mrf.mxu0 }
 0x101   : > { %v688_v4 = vpack.c.bf16 %v674_v0, %v673_v63  ;;  %v625_v7 = vadd.f32 %v2752_v1, %v3430_v45 }
 0x102   : > { %v2754_v6 = vpop.f32.mrf.mxu0 }
 0x103   : > { %v2755_v8 = vadd.f32 %v2754_v6, %v2753_v2  ;;  %3027 = vmatmul.mubr.bf16.vlgmr.msra.gmra.mxu1 %v688_v4  ;;  %v675_v14 = vmax.f32 %v625_v7, 0.0 }
 0x104   : > { %v2756_v9 = vpop.f32.mrf.mxu0  ;;  %996 = vmatpush1.bf16.msra.mxu1 %v3131_v3 }
 0x105   : > { %v628_v11 = vadd.f32 %v2755_v8, %v3430_v45  ;;  %997 = vmatprep.subr.bf16.mxu1 %v3136_v5 }
 0x106   : > { %v2757_v13 = vpop.f32.mrf.mxu0 }
 0x107   : > { %v676_v15 = vmax.f32 %v628_v11, 0.0  ;;  %v2758_v16 = vadd.f32 %v2757_v13, %v2756_v9  ;;  %v3146_v13 = vld [vmem:[%s4010_s5 + $0x20] ss:$8 sps:$4 sm:$0xff]  }
 0x108   : > { %v2759_v17 = vpop.f32.mrf.mxu0  ;;  %998 = vmatpush1.bf16.msra.mxu1 %v3134_v10 }
 0x109   : > { %v689_v19 = vpack.c.bf16 %v676_v15, %v675_v14  ;;  %999 = vmatprep.subr.bf16.mxu1 %v3139_v12  ;;  %v633_v22 = vadd.f32 %v2758_v16, %v3430_v45  ;;  %v3148_v12 = vld [vmem:[%s4010_s5 + $0x24] ss:$8 sps:$4 sm:$0xff]   ;;  %v3151_v14 = vld [vmem:[%s4010_s5 + $0x14] ss:$8 sps:$4 sm:$0xff]   ;;  %v3152_v16 = vld [vmem:[%s4010_s5] ss:$8 sps:$4 sm:$0xff]  }
 0x10a   : > { %v2760_v21 = vpop.f32.mrf.mxu0  ;;  %v3154_v15 = vld [vmem:[%s4010_s5 + $0x4] ss:$8 sps:$4 sm:$0xff]  }
 0x10b   : > { %v2761_v23 = vadd.f32 %v2760_v21, %v2759_v17  ;;  %3030 = vmatprep.mubr.bf16.mxu1 %v689_v19  ;;  %v677_v29 = vmax.f32 %v633_v22, 0.0  ;;  %v3155_v17 = vld [vmem:[%s4006_s1 + $0x78] sm:$0xff]   ;;  %v3500_v21 = vld [vmem:[%s4009_s4] ss:$0 sm:$0xff] }
 0x10c   : > { %v2762_v24 = vpop.f32.mrf.mxu0  ;;  %1000 = vmatpush1.bf16.msra.mxu1 %v3137_v18  ;;  %v3267_v18 = vmov 0  }
 0x10d   : > { %v636_v26 = vadd.f32 %v2761_v23, %v3430_v45  ;;  %1001 = vmatprep.subr.bf16.mxu1 %v3142_v20 }
 0x10e   : > { %v2763_v28 = vpop.f32.mrf.mxu0 }
 0x10f   : > { %v678_v30 = vmax.f32 %v636_v26, 0.0  ;;  %v2764_v31 = vadd.f32 %v2763_v28, %v2762_v24  ;;  %v3195_v24 = vld [vmem:[%s4012_s7 + $0x78] sm:$0xff]   ;;  %v3197_v26 = vld [vmem:[%s4012_s7 + $0x70] sm:$0xff]  }
 0x110   : > { %v2765_v32 = vpop.f32.mrf.mxu0  ;;  %1002 = vmatpush1.bf16.msra.mxu1 %v3140_v25  ;;  %v3196_v25 = vld [vmem:[%s4012_s7 + $0x38] sm:$0xff]   ;;  %2802 = vmatprep.subr.bf16.mxu0 %v3195_v24 }
 0x111   : > { %v690_v34 = vpack.c.bf16 %v678_v30, %v677_v29  ;;  %1003 = vmatprep.subr.bf16.mxu1 %v3145_v27  ;;  %v641_v36 = vadd.f32 %v2764_v31, %v3430_v45  ;;  %2803 = vmatpush3.bf16.msra.mxu0 %v3196_v25  ;;  %v3198_v29 = vld [vmem:[%s4012_s7 + $0x30] sm:$0xff]  }
 0x112   : > { %v2766_v35 = vpop.f32.mrf.mxu0  ;;  %2804 = vmatprep.subr.bf16.mxu0 %v3197_v26 }
 0x113   : > { %v2767_v37 = vadd.f32 %v2766_v35, %v2765_v32  ;;  %3031 = vmatmul.mubr.bf16.gmra.mxu1 %v690_v34  ;;  %v679_v41 = vmax.f32 %v641_v36, 0.0  ;;  %v3199_v32 = vld [vmem:[%s4012_s7 + $0x68] sm:$0xff]   ;;  %v3157_v36 = vld [vmem:[%s4006_s1 + $0x70] sm:$0xff]  }
 0x114   : > { %v2768_v38 = vpop.f32.mrf.mxu0  ;;  %1004 = vmatpush1.bf16.msra.mxu1 %v3143_v33  ;;  %v3156_v33 = vld [vmem:[%s4006_s1 + $0x38] sm:$0xff]  }
 0x115   : > { %v644_v39 = vadd.f32 %v2767_v37, %v3430_v45  ;;  %1005 = vmatprep.subr.bf16.mxu1 %v3148_v12  ;;  %2805 = vmatpush3.bf16.msra.mxu0 %v3198_v29  ;;  %v3200_v37 = vld [vmem:[%s4012_s7 + $0x28] sm:$0xff]   ;;  %v3169_v12 = vld [vmem:[%s4006_s1 + $0x40] sm:$0xff]  }
 0x116   : > { %v2769_v40 = vpop.f32.mrf.mxu0  ;;  %2806 = vmatprep.subr.bf16.mxu0 %v3199_v32 }
 0x117   : > { %v680_v42 = vmax.f32 %v644_v39, 0.0  ;;  %v2770_v43 = vadd.f32 %v2769_v40, %v2768_v38  ;;  %v3201_v39 = vld [vmem:[%s4012_s7 + $0x60] sm:$0xff]   ;;  %v3158_v40 = vld [vmem:[%s4006_s1 + $0x30] sm:$0xff]  }
 0x118   : > { %v2771_v44 = vpop.f32.mrf.mxu0  ;;  %1006 = vmatpush1.bf16.msra.mxu1 %v3146_v13 }
 0x119   : > { %v691_v46 = vpack.c.bf16 %v680_v42, %v679_v41  ;;  %v649_v48 = vadd.f32 %v2770_v43, %v3430_v45  ;;  %1007 = vmatprep.subr.bf16.mxu1 %v3151_v14  ;;  %v3159_v42 = vld [vmem:[%s4006_s1 + $0x68] sm:$0xff]   ;;  %2807 = vmatpush3.bf16.msra.mxu0 %v3200_v37 }
 0x11a   : > { %v2772_v47 = vpop.f32.mrf.mxu0  ;;  %2808 = vmatprep.subr.bf16.mxu0 %v3201_v39 }
 0x11b   : > { %v2773_v49 = vadd.f32 %v2772_v47, %v2771_v44  ;;  %3034 = vmatprep.mubr.bf16.mxu1 %v691_v46  ;;  %v681_v53 = vmax.f32 %v649_v48, 0.0  ;;  %v3202_v44 = vld [vmem:[%s4012_s7 + $0x20] sm:$0xff]   ;;  %v3203_v47 = vld [vmem:[%s4012_s7 + $0x58] sm:$0xff]  }
 0x11c   : > { %v2774_v50 = vpop.f32.mrf.mxu0 }
 0x11d   : > { %v652_v51 = vadd.f32 %v2773_v49, %v3430_v45  ;;  %v3160_v49 = vld [vmem:[%s4006_s1 + $0x28] sm:$0xff]   ;;  %2809 = vmatpush3.bf16.msra.mxu0 %v3202_v44  ;;  %v3176_v44 = vld [vmem:[%s3361_s14 + $0x90] ss:$8 sps:$4 sm:$0xff]  }
 0x11e   : > { %v2775_v52 = vpop.f32.mrf.mxu0  ;;  %2810 = vmatprep.subr.bf16.mxu0 %v3203_v47  ;;  %v3208_v47 = vld [vmem:[%s4012_s7 + $0x8] sm:$0xff]  }
 0x11f   : > { %v682_v54 = vmax.f32 %v652_v51, 0.0  ;;  %v2776_v55 = vadd.f32 %v2775_v52, %v2774_v50  ;;  %v3161_v51 = vld [vmem:[%s4006_s1 + $0x60] sm:$0xff]  }
 0x120   : > { %v2777_v56 = vpop.f32.mrf.mxu0 }
 0x121   : > { %v692_v57 = vpack.c.bf16 %v682_v54, %v681_v53  ;;  %v657_v59 = vadd.f32 %v2776_v55, %v3430_v45  ;;  %v3204_v53 = vld [vmem:[%s4012_s7 + $0x18] sm:$0xff]   ;;  %v3205_v55 = vld [vmem:[%s4012_s7 + $0x50] sm:$0xff]  }
 0x122   : > { %v2778_v58 = vpop.f32.mrf.mxu0  ;;  %2811 = vmatpush3.bf16.msra.mxu0 %v3204_v53  ;;  %v3183_v53 = vld [vmem:[%s3361_s14 + $0xc4] ss:$8 sps:$4 sm:$0xff]  }
 0x123   : > { %v2779_v60 = vadd.f32 %v2778_v58, %v2777_v56  ;;  %3035 = vmatmul.mubr.bf16.gmra.mxu1 %v692_v57  ;;  %v683_v0 = vmax.f32 %v657_v59, 0.0  ;;  %v3162_v57 = vld [vmem:[%s4006_s1 + $0x20] sm:$0xff]   ;;  %v3163_v59 = vld [vmem:[%s4006_s1 + $0x58] sm:$0xff]   ;;  %2812 = vmatprep.subr.bf16.mxu0 %v3205_v55 }
 0x124   : > { %v2780_v61 = vpop.f32.mrf.mxu0  ;;  %v3185_v55 = vld [vmem:[%s3361_s14 + $0xc0] ss:$8 sps:$4 sm:$0xff]  }
 0x125   : > { %v660_v62 = vadd.f32 %v2779_v60, %v3430_v45  ;;  %v3206_v60 = vld [vmem:[%s4012_s7 + $0x10] sm:$0xff]  }
 0x126   : > { %v2781_v63 = vpop.f32.mrf.mxu0  ;;  %2813 = vmatpush3.bf16.msra.mxu0 %v3206_v60  ;;  %v3192_v60 = vld [vmem:[%s3361_s14 + $0xf4] ss:$8 sps:$4 sm:$0xff]  }
 0x127   : > { %v684_v1 = vmax.f32 %v660_v62, 0.0  ;;  %v2782_v2 = vadd.f32 %v2781_v63, %v2780_v61  ;;  %v3164_v63 = vld [vmem:[%s4006_s1 + $0x18] sm:$0xff]  }
 0x128   : > { %v2783_v3 = vpop.f32.mrf.mxu0 }
 0x129   : > { %v693_v4 = vpack.c.bf16 %v684_v1, %v683_v0  ;;  %v665_v6 = vadd.f32 %v2782_v2, %v3430_v45  ;;  %v3165_v2 = vld [vmem:[%s4006_s1 + $0x50] sm:$0xff]  }
 0x12a   : > { %v2784_v5 = vpop.f32.mrf.mxu0 }
 0x12b   : > { %v2785_v7 = vadd.f32 %v2784_v5, %v2783_v3  ;;  %3038 = vmatprep.mubr.bf16.mxu1 %v693_v4  ;;  %v685_v9 = vmax.f32 %v665_v6, 0.0  ;;  %v3166_v4 = vld [vmem:[%s4006_s1 + $0x10] sm:$0xff]   ;;  %v3167_v6 = vld [vmem:[%s4006_s1 + $0x48] sm:$0xff]  }
 0x12d   : > { %v668_v8 = vadd.f32 %v2785_v7, %v3430_v45  ;;  %v3149_v45 = vld [vmem:[%s4010_s5 + $0x10] ss:$8 sps:$4 sm:$0xff]  }
 0x12e   : > { %1008 = vmatpush1.bf16.msra.mxu1 %v3149_v45 }
 0x12f   : > { %v686_v10 = vmax.f32 %v668_v8, 0.0  ;;  %1009 = vmatprep.subr.bf16.mxu1 %v3154_v15  ;;  %v3170_v15 = vld [vmem:[%s4006_s1] sm:$0xff]  }
 0x131   : > { %v694_v11 = vpack.c.bf16 %v686_v10, %v685_v9  ;;  %v3168_v10 = vld [vmem:[%s4006_s1 + $0x8] sm:$0xff]  }
 0x132   : > { %1010 = vmatpush1.bf16.msra.mxu1 %v3152_v16 }
 0x133   : > { %3039 = vmatmul.mubr.bf16.gmra.mxu1 %v694_v11  ;;  %2866 = vmatprep.subr.bf16.mxu1 %v3155_v17 }
 0x134   : > { %1027 = vmatprep.mubr.bf16.mxu1 %v3267_v18 }
 0x1c3   : > { %v3028_v19 = vpop.f32.mrf.mxu1 }
 0x1c4   : > { %v809_v38 = vadd.f32 %v3028_v19, %v3500_v21 }
 0x1c5   : > { %v800_v20 = vpop.f32.mrf.mxu1 }
 0x1c6   : > { %v801_v23 = vadd.f32 %v3500_v21, %v800_v20  ;;  %v865_v46 = vmax.f32 %v809_v38, 0.0 }
 0x1c7   : > { %v3029_v22 = vpop.f32.mrf.mxu1 }
 0x1c8   : > { %v863_v30 = vmax.f32 %v801_v23, 0.0  ;;  %v812_v34 = vadd.f32 %v3029_v22, %v3500_v21 }
 0x1c9   : > { %v803_v27 = vpop.f32.mrf.mxu1 }
 0x1ca   : > { %v804_v28 = vadd.f32 %v3500_v21, %v803_v27  ;;  %v866_v41 = vmax.f32 %v812_v34, 0.0 }
 0x1cc   : > { %v864_v31 = vmax.f32 %v804_v28, 0.0  ;;  %v880_v50 = vpack.c.bf16 %v866_v41, %v865_v46  ;;  %v3177_v46 = vld [vmem:[%s3361_s14 + $0xa4] ss:$8 sps:$4 sm:$0xff]  }
 0x1ce   : > { %v879_v35 = vpack.c.bf16 %v864_v31, %v863_v30 }
 0x1d0   : > { %1028 = vmatmul.mubr.bf16.vlgmr.msra.gmra.mxu1 %v879_v35 }
 0x1d1   : > { %2867 = vmatpush3.bf16.msra.mxu1 %v3156_v33  ;;  %1037 = vmatprep.mubr.bf16.mxu1 %v3267_v18 }
 0x1d2   : > { %2868 = vmatprep.subr.bf16.mxu1 %v3157_v36 }
 0x1d3   : > { %v3032_v43 = vpop.f32.mrf.mxu1 }
 0x1d4   : > { %v825_v3 = vadd.f32 %v3032_v43, %v3500_v21  ;;  %v3174_v43 = vld [vmem:[%s3361_s14 + $0x94] ss:$8 sps:$4 sm:$0xff]  }
 0x1d5   : > { %v816_v48 = vpop.f32.mrf.mxu1  ;;  %2869 = vmatpush3.bf16.msra.mxu1 %v3158_v40  ;;  %v3173_v40 = vld [vmem:[%s3361_s14 + $0x84] ss:$8 sps:$4 sm:$0xff]  }
 0x1d6   : > { %2870 = vmatprep.subr.bf16.mxu1 %v3159_v42  ;;  %v817_v54 = vadd.f32 %v3500_v21, %v816_v48  ;;  %v869_v8 = vmax.f32 %v825_v3, 0.0  ;;  %v3171_v42 = vld [vmem:[%s3361_s14 + $0x80] ss:$8 sps:$4 sm:$0xff]  }
 0x1d7   : > { %v3033_v52 = vpop.f32.mrf.mxu1  ;;  %v3209_v48 = vld [vmem:[%s4012_s7 + $0x40] sm:$0xff]  }
 0x1d8   : > { %1038 = vmatmul.mubr.bf16.gmra.mxu1 %v880_v50  ;;  %v867_v61 = vmax.f32 %v817_v54, 0.0  ;;  %v828_v0 = vadd.f32 %v3033_v52, %v3500_v21  ;;  %v3179_v50 = vld [vmem:[%s3361_s14 + $0xa0] ss:$8 sps:$4 sm:$0xff]   ;;  %v3182_v52 = vld [vmem:[%s3361_s14 + $0xb0] ss:$8 sps:$4 sm:$0xff]  }
 0x1d9   : > { %v819_v56 = vpop.f32.mrf.mxu1  ;;  %1047 = vmatprep.mubr.bf16.mxu1 %v3267_v18  ;;  %2871 = vmatpush3.bf16.msra.mxu1 %v3160_v49  ;;  %v3210_v49 = vld [vmem:[%s4012_s7] sm:$0xff]   ;;  %v3211_v54 = vld [vmem:[%s4008_s3 + $0x38] sm:$0xff]  }
 0x1da   : > { %v820_v58 = vadd.f32 %v3500_v21, %v819_v56  ;;  %2872 = vmatprep.subr.bf16.mxu1 %v3161_v51  ;;  %v870_v5 = vmax.f32 %v828_v0, 0.0  ;;  %v3180_v51 = vld [vmem:[%s3361_s14 + $0xb4] ss:$8 sps:$4 sm:$0xff]  }
 0x1db   : > { %v3186_v56 = vld [vmem:[%s3361_s14 + $0xd4] ss:$8 sps:$4 sm:$0xff]  }
 0x1dc   : > { %v868_v62 = vmax.f32 %v820_v58, 0.0  ;;  %v882_v11 = vpack.c.bf16 %v870_v5, %v869_v8  ;;  %v3189_v58 = vld [vmem:[%s3361_s14 + $0xe4] ss:$8 sps:$4 sm:$0xff]  }
 0x1dd   : > { %2873 = vmatpush3.bf16.msra.mxu1 %v3162_v57  ;;  %v3188_v57 = vld [vmem:[%s3361_s14 + $0xd0] ss:$8 sps:$4 sm:$0xff]  }
 0x1de   : > { %v881_v1 = vpack.c.bf16 %v868_v62, %v867_v61  ;;  %2874 = vmatprep.subr.bf16.mxu1 %v3163_v59  ;;  %v3191_v59 = vld [vmem:[%s3361_s14 + $0xe0] ss:$8 sps:$4 sm:$0xff]   ;;  %v3194_v61 = vld [vmem:[%s3361_s14 + $0xf0] ss:$8 sps:$4 sm:$0xff]   ;;  %v905_v62 = vlaneseq }
 0x1e0   : > { %1048 = vmatmul.mubr.bf16.gmra.mxu1 %v881_v1 }
 0x1e1   : > { %1057 = vmatprep.mubr.bf16.mxu1 %v3267_v18  ;;  %2875 = vmatpush3.bf16.msra.mxu1 %v3164_v63  ;;  %v3637_v63 = vshrl.u32 %v905_v62, 7 }
 0x1e2   : > { %2876 = vmatprep.subr.bf16.mxu1 %v3165_v2  ;;  %v903_v2 = vld [vmem:[%s4011_s6] sm:$0x3] }
 0x1e3   : > { %v3036_v7 = vpop.f32.mrf.mxu1  ;;  %v911_v0 = vsub.s32 1, %v3637_v63  ;;  %v907_v1 = vsub.s32 0, %v3637_v63 }
 0x1e4   : > { %v841_v23 = vadd.f32 %v3036_v7, %v3500_v21 }
 0x1e5   : > { %v832_v9 = vpop.f32.mrf.mxu1  ;;  %2877 = vmatpush3.bf16.msra.mxu1 %v3166_v4  ;;  %v3646_v4 = vrot.slane %v903_v2, %v911_v0  ;;  %v3650_v5 = vrot.slane %v903_v2, %v907_v1  ;;  %v3217_v2 = vld [vmem:[%s4008_s3 + $0x8] sm:$0xff]  }
 0x1e6   : > { %2878 = vmatprep.subr.bf16.mxu1 %v3167_v6  ;;  %v833_v14 = vadd.f32 %v3500_v21, %v832_v9  ;;  %v873_v26 = vmax.f32 %v841_v23, 0.0  ;;  %v3212_v23 = vld [vmem:[%s4008_s3 + $0x30] sm:$0xff]  }
 0x1e7   : > { %v3037_v13 = vpop.f32.mrf.mxu1 }
 0x1e8   : > { %1058 = vmatmul.mubr.bf16.gmra.mxu1 %v882_v11  ;;  %v871_v17 = vmax.f32 %v833_v14, 0.0  ;;  %v844_v20 = vadd.f32 %v3037_v13, %v3500_v21 }
 0x1e9   : > { %v835_v45 = vpop.f32.mrf.mxu1  ;;  %1067 = vmatprep.mubr.bf16.mxu1 %v3267_v18  ;;  %2879 = vmatpush3.bf16.msra.mxu1 %v3168_v10 }
 0x1ea   : > { %v836_v16 = vadd.f32 %v3500_v21, %v835_v45  ;;  %2880 = vmatprep.subr.bf16.mxu1 %v3169_v12  ;;  %v874_v24 = vmax.f32 %v844_v20, 0.0 }
 0x1ec   : > { %v872_v19 = vmax.f32 %v836_v16, 0.0  ;;  %v884_v28 = vpack.c.bf16 %v874_v24, %v873_v26 }
 0x1ed   : > { %2881 = vmatpush3.bf16.msra.mxu1 %v3170_v15 }
 0x1ee   : > { %v883_v22 = vpack.c.bf16 %v872_v19, %v871_v17 }
 0x1f0   : > { %1068 = vmatmul.mubr.bf16.gmra.mxu1 %v883_v22 }
 0x1f1   : > { %1077 = vmatprep.mubr.bf16.mxu1 %v3267_v18 }
 0x1f3   : > { %v3040_v25 = vpop.f32.mrf.mxu1 }
 0x1f4   : > { %v857_v37 = vadd.f32 %v3040_v25, %v3500_v21 }
 0x1f5   : > { %v848_v27 = vpop.f32.mrf.mxu1 }
 0x1f6   : > { %v849_v30 = vadd.f32 %v3500_v21, %v848_v27  ;;  %v877_v39 = vmax.f32 %v857_v37, 0.0 }
 0x1f7   : > { %v3041_v29 = vpop.f32.mrf.mxu1 }
 0x1f8   : > { %1078 = vmatmul.mubr.bf16.gmra.mxu1 %v884_v28  ;;  %v875_v33 = vmax.f32 %v849_v30, 0.0  ;;  %v860_v35 = vadd.f32 %v3041_v29, %v3500_v21 }
 0x1f9   : > { %v851_v31 = vpop.f32.mrf.mxu1  ;;  %1087 = vmatprep.mubr.bf16.mxu1 %v3267_v18 }
 0x1fa   : > { %v852_v32 = vadd.f32 %v3500_v21, %v851_v31  ;;  %v878_v38 = vmax.f32 %v860_v35, 0.0  ;;  %v3207_v21 = vld [vmem:[%s4012_s7 + $0x48] sm:$0xff]  }
 0x1fb   : > { %2814 = vmatprep.subr.bf16.mxu0 %v3207_v21  ;;  %v3213_v31 = vld [vmem:[%s4008_s3 + $0x28] sm:$0xff]  }
 0x1fc   : > { %v876_v34 = vmax.f32 %v852_v32, 0.0  ;;  %v886_v41 = vpack.c.bf16 %v878_v38, %v877_v39  ;;  %2815 = vmatpush3.bf16.msra.mxu0 %v3208_v47  ;;  %v3214_v39 = vld [vmem:[%s4008_s3 + $0x20] sm:$0xff]   ;;  %v3215_v47 = vld [vmem:[%s4008_s3 + $0x18] sm:$0xff]  }
 0x1fd   : > { %2816 = vmatprep.subr.bf16.mxu0 %v3209_v48 }
 0x1fe   : > { %v885_v36 = vpack.c.bf16 %v876_v34, %v875_v33 }
 0x200   : > { %1088 = vmatmul.mubr.bf16.gmra.mxu1 %v885_v36  ;;  %2817 = vmatpush3.bf16.msra.mxu0 %v3210_v49 }
 0x201   : > { %1097 = vmatprep.mubr.bf16.mxu1 %v3267_v18  ;;  %3042 = vmatprep.subr.bf16.mxu0 %v3211_v54 }
 0x208   : > { %1098 = vmatmul.mubr.bf16.gmra.mxu1 %v886_v41 }
 0x209   : > { %1671 = vmatprep.mubr.bf16.mxu1 %v3173_v40 }
 0x210   : > { %1672 = vmatmul.mubr.bf16.vlgmr.msra.gmra.mxu1 %v3171_v42 }
 0x211   : > { %1679 = vmatprep.mubr.bf16.mxu1 %v3174_v43 }
 0x218   : > { %1680 = vmatmul.mubr.bf16.gmra.mxu1 %v3176_v44 }
 0x219   : > { %1687 = vmatprep.mubr.bf16.mxu1 %v3177_v46 }
 0x220   : > { %1688 = vmatmul.mubr.bf16.gmra.mxu1 %v3179_v50 }
 0x221   : > { %1695 = vmatprep.mubr.bf16.mxu1 %v3180_v51 }
 0x228   : > { %1696 = vmatmul.mubr.bf16.gmra.mxu1 %v3182_v52 }
 0x229   : > { %1703 = vmatprep.mubr.bf16.mxu1 %v3183_v53 }
 0x230   : > { %1704 = vmatmul.mubr.bf16.gmra.mxu1 %v3185_v55  ;;  %v3216_v55 = vld [vmem:[%s4008_s3 + $0x10] sm:$0xff]  }
 0x231   : > { %1711 = vmatprep.mubr.bf16.mxu1 %v3186_v56 }
 0x238   : > { %1712 = vmatmul.mubr.bf16.gmra.mxu1 %v3188_v57 }
 0x239   : > { %1719 = vmatprep.mubr.bf16.mxu1 %v3189_v58 }
 0x240   : > { %1720 = vmatmul.mubr.bf16.gmra.mxu1 %v3191_v59 }
 0x241   : > { %1727 = vmatprep.mubr.bf16.mxu1 %v3192_v60 }
 0x248   : > { %1728 = vmatmul.mubr.bf16.gmra.mxu1 %v3194_v61 }
 0x290   : > { %v1029_v3 = vpop.f32.mrf.mxu1 }
 0x291   : > { %v1030_v10 = vadd.f32 %v1029_v3, %v3650_v5 }
 0x292   : > { %v1031_v6 = vpop.f32.mrf.mxu1 }
 0x293   : > { %v1032_v8 = vadd.f32 %v1031_v6, %v3646_v4  ;;  %v1108_v16 = vmax.f32 %v1030_v10, 0.0 }
 0x294   : > { %v1033_v7 = vpop.f32.mrf.mxu1 }
 0x295   : > { %v1034_v9 = vadd.f32 %v1033_v7, %v3650_v5  ;;  %v1109_v45 = vmax.f32 %v1032_v8, 0.0 }
 0x296   : > { %v1035_v11 = vpop.f32.mrf.mxu1 }
 0x297   : > { %v1036_v12 = vadd.f32 %v1035_v11, %v3646_v4  ;;  %v1110_v13 = vmax.f32 %v1034_v9, 0.0 }
 0x298   : > { %v1039_v14 = vpop.f32.mrf.mxu1 }
 0x299   : > { %v1111_v15 = vmax.f32 %v1036_v12, 0.0  ;;  %v1140_v20 = vpack.c.bf16 %v1110_v13, %v1108_v16  ;;  %v1040_v26 = vadd.f32 %v1039_v14, %v3650_v5  ;;  %v3218_v12 = vld [vmem:[%s4008_s3] sm:$0xff]  }
 0x29a   : > { %v1041_v17 = vpop.f32.mrf.mxu1 }
 0x29b   : > { %v1141_v19 = vpack.c.bf16 %v1111_v15, %v1109_v45  ;;  %v1042_v24 = vadd.f32 %v1041_v17, %v3646_v4  ;;  %v1112_v34 = vmax.f32 %v1040_v26, 0.0 }
 0x29c   : > { %v1043_v22 = vpop.f32.mrf.mxu1 }
 0x29d   : > { %v1044_v25 = vadd.f32 %v1043_v22, %v3650_v5  ;;  %1323 = vmatprep.mubr.bf16.mxu0 %v1141_v19  ;;  %v1113_v32 = vmax.f32 %v1042_v24, 0.0 }
 0x29e   : > { %v1045_v27 = vpop.f32.mrf.mxu1  ;;  %1324 = vmatmul.mubr.bf16.vlgmr.msra.gmra.mxu0 %v1140_v20 }
 0x29f   : > { %v1046_v28 = vadd.f32 %v1045_v27, %v3646_v4  ;;  %3043 = vmatpush3.bf16.msra.mxu0 %v3211_v54  ;;  %v1114_v29 = vmax.f32 %v1044_v25, 0.0 }
 0x2a0   : > { %v1049_v30 = vpop.f32.mrf.mxu1  ;;  %3044 = vmatprep.subr.bf16.mxu0 %v3212_v23 }
 0x2a1   : > { %v1115_v33 = vmax.f32 %v1046_v28, 0.0  ;;  %v1142_v37 = vpack.c.bf16 %v1114_v29, %v1112_v34  ;;  %v1050_v42 = vadd.f32 %v1049_v30, %v3650_v5 }
 0x2a2   : > { %v1051_v35 = vpop.f32.mrf.mxu1 }
 0x2a3   : > { %v1143_v36 = vpack.c.bf16 %v1115_v33, %v1113_v32  ;;  %3045 = vmatpush3.bf16.msra.mxu0 %v3212_v23  ;;  %v1052_v40 = vadd.f32 %v1051_v35, %v3646_v4  ;;  %v1116_v50 = vmax.f32 %v1050_v42, 0.0 }
 0x2a4   : > { %v1053_v38 = vpop.f32.mrf.mxu1  ;;  %3046 = vmatprep.subr.bf16.mxu0 %v3213_v31 }
 0x2a5   : > { %v1054_v41 = vadd.f32 %v1053_v38, %v3650_v5  ;;  %1331 = vmatprep.mubr.bf16.mxu0 %v1143_v36  ;;  %v1117_v48 = vmax.f32 %v1052_v40, 0.0 }
 0x2a6   : > { %v1055_v43 = vpop.f32.mrf.mxu1  ;;  %1332 = vmatmul.mubr.bf16.gmra.mxu0 %v1142_v37 }
 0x2a7   : > { %v1056_v44 = vadd.f32 %v1055_v43, %v3646_v4  ;;  %3047 = vmatpush3.bf16.msra.mxu0 %v3213_v31  ;;  %v1118_v21 = vmax.f32 %v1054_v41, 0.0 }
 0x2a8   : > { %v1059_v46 = vpop.f32.mrf.mxu1  ;;  %3048 = vmatprep.subr.bf16.mxu0 %v3214_v39 }
 0x2a9   : > { %v1119_v49 = vmax.f32 %v1056_v44, 0.0  ;;  %v1144_v53 = vpack.c.bf16 %v1118_v21, %v1116_v50  ;;  %v1060_v58 = vadd.f32 %v1059_v46, %v3650_v5 }
 0x2aa   : > { %v1061_v51 = vpop.f32.mrf.mxu1 }
 0x2ab   : > { %v1145_v52 = vpack.c.bf16 %v1119_v49, %v1117_v48  ;;  %3049 = vmatpush3.bf16.msra.mxu0 %v3214_v39  ;;  %v1062_v56 = vadd.f32 %v1061_v51, %v3646_v4  ;;  %v1120_v7 = vmax.f32 %v1060_v58, 0.0 }
 0x2ac   : > { %v1063_v54 = vpop.f32.mrf.mxu1  ;;  %3050 = vmatprep.subr.bf16.mxu0 %v3215_v47 }
 0x2ad   : > { %v1064_v57 = vadd.f32 %v1063_v54, %v3650_v5  ;;  %1339 = vmatprep.mubr.bf16.mxu0 %v1145_v52  ;;  %v1121_v3 = vmax.f32 %v1062_v56, 0.0 }
 0x2ae   : > { %v1065_v59 = vpop.f32.mrf.mxu1  ;;  %1340 = vmatmul.mubr.bf16.gmra.mxu0 %v1144_v53 }
 0x2af   : > { %v1066_v60 = vadd.f32 %v1065_v59, %v3646_v4  ;;  %3051 = vmatpush3.bf16.msra.mxu0 %v3215_v47  ;;  %v1122_v61 = vmax.f32 %v1064_v57, 0.0 }
 0x2b0   : > { %v1069_v62 = vpop.f32.mrf.mxu1  ;;  %3052 = vmatprep.subr.bf16.mxu0 %v3216_v55 }
 0x2b1   : > { %v1123_v6 = vmax.f32 %v1066_v60, 0.0  ;;  %v1146_v10 = vpack.c.bf16 %v1122_v61, %v1120_v7  ;;  %v1070_v45 = vadd.f32 %v1069_v62, %v3650_v5 }
 0x2b2   : > { %v1071_v8 = vpop.f32.mrf.mxu1 }
 0x2b3   : > { %v1147_v9 = vpack.c.bf16 %v1123_v6, %v1121_v3  ;;  %3053 = vmatpush3.bf16.msra.mxu0 %v3216_v55  ;;  %v1072_v13 = vadd.f32 %v1071_v8, %v3646_v4  ;;  %v1124_v23 = vmax.f32 %v1070_v45, 0.0 }
 0x2b4   : > { %v1073_v11 = vpop.f32.mrf.mxu1  ;;  %3054 = vmatprep.subr.bf16.mxu0 %v3217_v2 }
 0x2b5   : > { %v1074_v14 = vadd.f32 %v1073_v11, %v3650_v5  ;;  %1347 = vmatprep.mubr.bf16.mxu0 %v1147_v9  ;;  %v1125_v20 = vmax.f32 %v1072_v13, 0.0  ;;  %v3708_v11 = vld [vmem:[%s4007_s2] ss:$0 sm:$0xff] }
 0x2b6   : > { %v1075_v15 = vpop.f32.mrf.mxu1  ;;  %1348 = vmatmul.mubr.bf16.gmra.mxu0 %v1146_v10 }
 0x2b7   : > { %v1076_v16 = vadd.f32 %v1075_v15, %v3646_v4  ;;  %3055 = vmatpush3.bf16.msra.mxu0 %v3217_v2  ;;  %v1126_v17 = vmax.f32 %v1074_v14, 0.0 }
 0x2b8   : > { %v1079_v19 = vpop.f32.mrf.mxu1  ;;  %3056 = vmatprep.subr.bf16.mxu0 %v3218_v12 }
 0x2b9   : > { %v1127_v22 = vmax.f32 %v1076_v16, 0.0  ;;  %v1148_v26 = vpack.c.bf16 %v1126_v17, %v1124_v23  ;;  %v1080_v30 = vadd.f32 %v1079_v19, %v3650_v5 }
 0x2ba   : > { %v1081_v24 = vpop.f32.mrf.mxu1 }
 0x2bb   : > { %v1149_v25 = vpack.c.bf16 %v1127_v22, %v1125_v20  ;;  %3057 = vmatpush3.bf16.msra.mxu0 %v3218_v12  ;;  %v1082_v28 = vadd.f32 %v1081_v24, %v3646_v4  ;;  %v1128_v37 = vmax.f32 %v1080_v30, 0.0 }
 0x2bc   : > { %v1083_v27 = vpop.f32.mrf.mxu1 }
 0x2bd   : > { %v1084_v29 = vadd.f32 %v1083_v27, %v3650_v5  ;;  %1355 = vmatprep.mubr.bf16.mxu0 %v1149_v25  ;;  %v1129_v35 = vmax.f32 %v1082_v28, 0.0 }
 0x2be   : > { %v1085_v31 = vpop.f32.mrf.mxu1  ;;  %1356 = vmatmul.mubr.bf16.gmra.mxu0 %v1148_v26 }
 0x2bf   : > { %v1086_v32 = vadd.f32 %v1085_v31, %v3646_v4  ;;  %v1130_v33 = vmax.f32 %v1084_v29, 0.0 }
 0x2c0   : > { %v1089_v34 = vpop.f32.mrf.mxu1 }
 0x2c1   : > { %v1131_v36 = vmax.f32 %v1086_v32, 0.0  ;;  %v1150_v40 = vpack.c.bf16 %v1130_v33, %v1128_v37  ;;  %v1090_v44 = vadd.f32 %v1089_v34, %v3650_v5 }
 0x2c2   : > { %v1091_v38 = vpop.f32.mrf.mxu1 }
 0x2c3   : > { %v1151_v39 = vpack.c.bf16 %v1131_v36, %v1129_v35  ;;  %v1092_v42 = vadd.f32 %v1091_v38, %v3646_v4  ;;  %v1132_v51 = vmax.f32 %v1090_v44, 0.0 }
 0x2c4   : > { %v1093_v41 = vpop.f32.mrf.mxu1 }
 0x2c5   : > { %v1094_v43 = vadd.f32 %v1093_v41, %v3650_v5  ;;  %1363 = vmatprep.mubr.bf16.mxu0 %v1151_v39  ;;  %v1133_v49 = vmax.f32 %v1092_v42, 0.0 }
 0x2c6   : > { %v1095_v21 = vpop.f32.mrf.mxu1  ;;  %1364 = vmatmul.mubr.bf16.gmra.mxu0 %v1150_v40 }
 0x2c7   : > { %v1096_v46 = vadd.f32 %v1095_v21, %v3646_v4  ;;  %v1134_v47 = vmax.f32 %v1094_v43, 0.0 }
 0x2c8   : > { %v1099_v48 = vpop.f32.mrf.mxu1 }
 0x2c9   : > { %v1135_v50 = vmax.f32 %v1096_v46, 0.0  ;;  %v1152_v54 = vpack.c.bf16 %v1134_v47, %v1132_v51  ;;  %v1100_v58 = vadd.f32 %v1099_v48, %v3650_v5 }
 0x2ca   : > { %v1101_v52 = vpop.f32.mrf.mxu1 }
 0x2cb   : > { %v1153_v53 = vpack.c.bf16 %v1135_v50, %v1133_v49  ;;  %v1102_v56 = vadd.f32 %v1101_v52, %v3646_v4  ;;  %v1136_v6 = vmax.f32 %v1100_v58, 0.0 }
 0x2cc   : > { %v1103_v55 = vpop.f32.mrf.mxu1 }
 0x2cd   : > { %v1104_v57 = vadd.f32 %v1103_v55, %v3650_v5  ;;  %1371 = vmatprep.mubr.bf16.mxu0 %v1153_v53  ;;  %v1137_v2 = vmax.f32 %v1102_v56, 0.0 }
 0x2ce   : > { %v1105_v59 = vpop.f32.mrf.mxu1  ;;  %1372 = vmatmul.mubr.bf16.gmra.mxu0 %v1152_v54 }
 0x2cf   : > { %v1106_v60 = vadd.f32 %v1105_v59, %v3646_v4  ;;  %v1138_v61 = vmax.f32 %v1104_v57, 0.0 }
 0x2d0   : > { %v2882_v62 = vpop.f32.mrf.mxu1 }
 0x2d1   : > { %v1139_v3 = vmax.f32 %v1106_v60, 0.0  ;;  %v1154_v10 = vpack.c.bf16 %v1138_v61, %v1136_v6 }
 0x2d2   : > { %v2883_v7 = vpop.f32.mrf.mxu1 }
 0x2d3   : > { %v1155_v8 = vpack.c.bf16 %v1139_v3, %v1137_v2  ;;  %v2884_v9 = vadd.f32 %v2883_v7, %v2882_v62 }
 0x2d4   : > { %v2885_v12 = vpop.f32.mrf.mxu1 }
 0x2d5   : > { %1379 = vmatprep.mubr.bf16.mxu0 %v1155_v8  ;;  %v1674_v4 = vadd.f32 %v2884_v9, %v3708_v11 }
 0x2d6   : > { %1380 = vmatmul.mubr.bf16.gmra.mxu0 %v1154_v10  ;;  %v2886_v5 = vpop.f32.mrf.mxu1 }
 0x2d7   : > { %v2887_v13 = vadd.f32 %v2886_v5, %v2885_v12  ;;  %v1736_v16 = vmax.f32 %v1674_v4, 0.0 }
 0x2d8   : > { %v2888_v14 = vpop.f32.mrf.mxu1 }
 0x2d9   : > { %v1677_v45 = vadd.f32 %v2887_v13, %v3708_v11 }
 0x2da   : > { %v2889_v15 = vpop.f32.mrf.mxu1 }
 0x2db   : > { %v1737_v17 = vmax.f32 %v1677_v45, 0.0  ;;  %v2890_v19 = vadd.f32 %v2889_v15, %v2888_v14 }
 0x2dc   : > { %v2891_v20 = vpop.f32.mrf.mxu1 }
 0x2dd   : > { %v1752_v22 = vpack.c.bf16 %v1737_v17, %v1736_v16  ;;  %v1682_v24 = vadd.f32 %v2890_v19, %v3708_v11 }
 0x2de   : > { %v2892_v23 = vpop.f32.mrf.mxu1 }
 0x2df   : > { %v2893_v25 = vadd.f32 %v2892_v23, %v2891_v20  ;;  %3058 = vmatprep.mubr.bf16.mxu0 %v1752_v22  ;;  %v1738_v29 = vmax.f32 %v1682_v24, 0.0 }
 0x2e0   : > { %v2894_v26 = vpop.f32.mrf.mxu1 }
 0x2e1   : > { %v1685_v27 = vadd.f32 %v2893_v25, %v3708_v11 }
 0x2e2   : > { %v2895_v28 = vpop.f32.mrf.mxu1 }
 0x2e3   : > { %v1739_v30 = vmax.f32 %v1685_v27, 0.0  ;;  %v2896_v31 = vadd.f32 %v2895_v28, %v2894_v26 }
 0x2e4   : > { %v2897_v32 = vpop.f32.mrf.mxu1 }
 0x2e5   : > { %v1753_v33 = vpack.c.bf16 %v1739_v30, %v1738_v29  ;;  %v1690_v35 = vadd.f32 %v2896_v31, %v3708_v11 }
 0x2e6   : > { %v2898_v34 = vpop.f32.mrf.mxu1 }
 0x2e7   : > { %v2899_v36 = vadd.f32 %v2898_v34, %v2897_v32  ;;  %3059 = vmatmul.mubr.bf16.vlgmr.msra.gmra.mxu0 %v1753_v33  ;;  %v1740_v40 = vmax.f32 %v1690_v35, 0.0  ;;  %v3221_v34 = vld [vmem:[%s4010_s5 + $0x74] ss:$8 sps:$4 sm:$0xff]  }
 0x2e8   : > { %v2900_v37 = vpop.f32.mrf.mxu1  ;;  %2060 = vmatprep.subr.bf16.mxu0 %v3221_v34  ;;  %v3253_v34 = vld [vmem:[%s4012_s7 + $0x50] sm:$0xff]  }
 0x2e9   : > { %v1693_v38 = vadd.f32 %v2899_v36, %v3708_v11 }
 0x2ea   : > { %v2901_v39 = vpop.f32.mrf.mxu1 }
 0x2eb   : > { %v1741_v41 = vmax.f32 %v1693_v38, 0.0  ;;  %v2902_v42 = vadd.f32 %v2901_v39, %v2900_v37  ;;  %v3219_v37 = vld [vmem:[%s4010_s5 + $0x70] ss:$8 sps:$4 sm:$0xff]   ;;  %v3224_v39 = vld [vmem:[%s4010_s5 + $0x64] ss:$8 sps:$4 sm:$0xff]  }
 0x2ec   : > { %v2903_v43 = vpop.f32.mrf.mxu1  ;;  %2061 = vmatpush1.bf16.msra.mxu0 %v3219_v37 }
 0x2ed   : > { %v1754_v44 = vpack.c.bf16 %v1741_v41, %v1740_v40  ;;  %v1698_v46 = vadd.f32 %v2902_v42, %v3708_v11  ;;  %2062 = vmatprep.subr.bf16.mxu0 %v3224_v39  ;;  %v3227_v40 = vld [vmem:[%s4010_s5 + $0x54] ss:$8 sps:$4 sm:$0xff]   ;;  %v3225_v41 = vld [vmem:[%s4010_s5 + $0x50] ss:$8 sps:$4 sm:$0xff]   ;;  %v3230_v42 = vld [vmem:[%s4010_s5 + $0x44] ss:$8 sps:$4 sm:$0xff]  }
 0x2ee   : > { %v2904_v21 = vpop.f32.mrf.mxu1 }
 0x2ef   : > { %v2905_v47 = vadd.f32 %v2904_v21, %v2903_v43  ;;  %3062 = vmatprep.mubr.bf16.mxu0 %v1754_v44  ;;  %v1742_v51 = vmax.f32 %v1698_v46, 0.0  ;;  %v3228_v43 = vld [vmem:[%s4010_s5 + $0x40] ss:$8 sps:$4 sm:$0xff]   ;;  %v3231_v44 = vld [vmem:[%s4010_s5 + $0x30] ss:$8 sps:$4 sm:$0xff]  }
 0x2f0   : > { %v2906_v48 = vpop.f32.mrf.mxu1  ;;  %v3233_v21 = vld [vmem:[%s4010_s5 + $0x34] ss:$8 sps:$4 sm:$0xff]   ;;  %v3236_v46 = vld [vmem:[%s4010_s5 + $0x24] ss:$8 sps:$4 sm:$0xff]  }
 0x2f1   : > { %v1701_v49 = vadd.f32 %v2905_v47, %v3708_v11  ;;  %v3234_v47 = vld [vmem:[%s4010_s5 + $0x20] ss:$8 sps:$4 sm:$0xff]  }
 0x2f2   : > { %v2907_v50 = vpop.f32.mrf.mxu1 }
 0x2f3   : > { %v1743_v52 = vmax.f32 %v1701_v49, 0.0  ;;  %v2908_v53 = vadd.f32 %v2907_v50, %v2906_v48  ;;  %v3239_v48 = vld [vmem:[%s4010_s5 + $0x14] ss:$8 sps:$4 sm:$0xff]   ;;  %v3237_v49 = vld [vmem:[%s4010_s5 + $0x10] ss:$8 sps:$4 sm:$0xff]  }
 0x2f4   : > { %v2909_v54 = vpop.f32.mrf.mxu1  ;;  %v3242_v50 = vld [vmem:[%s4010_s5 + $0x4] ss:$8 sps:$4 sm:$0xff]  }
 0x2f5   : > { %v1755_v55 = vpack.c.bf16 %v1743_v52, %v1742_v51  ;;  %v1706_v57 = vadd.f32 %v2908_v53, %v3708_v11  ;;  %v3240_v51 = vld [vmem:[%s4010_s5] ss:$8 sps:$4 sm:$0xff]  }
 0x2f6   : > { %v2910_v56 = vpop.f32.mrf.mxu1  ;;  %v3778_v53 = vld [vmem:[%s4013_s8] ss:$0 sm:$0xff] }
 0x2f7   : > { %v2911_v58 = vadd.f32 %v2910_v56, %v2909_v54  ;;  %3063 = vmatmul.mubr.bf16.gmra.mxu0 %v1755_v55  ;;  %v1744_v62 = vmax.f32 %v1706_v57, 0.0 }
 0x2f8   : > { %v2912_v59 = vpop.f32.mrf.mxu1 }
 0x2f9   : > { %v1709_v60 = vadd.f32 %v2911_v58, %v3708_v11 }
 0x2fa   : > { %v2913_v61 = vpop.f32.mrf.mxu1 }
 0x2fb   : > { %v1745_v2 = vmax.f32 %v1709_v60, 0.0  ;;  %v2914_v3 = vadd.f32 %v2913_v61, %v2912_v59 }
 0x2fc   : > { %v2915_v6 = vpop.f32.mrf.mxu1 }
 0x2fd   : > { %v1756_v7 = vpack.c.bf16 %v1745_v2, %v1744_v62  ;;  %v1714_v9 = vadd.f32 %v2914_v3, %v3708_v11 }
 0x2fe   : > { %v2916_v8 = vpop.f32.mrf.mxu1 }
 0x2ff   : > { %v2917_v10 = vadd.f32 %v2916_v8, %v2915_v6  ;;  %3066 = vmatprep.mubr.bf16.mxu0 %v1756_v7  ;;  %v1746_v13 = vmax.f32 %v1714_v9, 0.0  ;;  %v3243_v8 = vld [vmem:[%s4012_s7 + $0x78] sm:$0xff]  }
 0x300   : > { %v2918_v12 = vpop.f32.mrf.mxu1  ;;  %v3244_v9 = vld [vmem:[%s4012_s7 + $0x38] sm:$0xff]   ;;  %2946 = vmatprep.subr.bf16.mxu1 %v3243_v8 }
 0x301   : > { %v1717_v5 = vadd.f32 %v2917_v10, %v3708_v11  ;;  %v3245_v10 = vld [vmem:[%s4012_s7 + $0x70] sm:$0xff]   ;;  %2947 = vmatpush3.bf16.msra.mxu1 %v3244_v9 }
 0x302   : > { %v2919_v4 = vpop.f32.mrf.mxu1  ;;  %2948 = vmatprep.subr.bf16.mxu1 %v3245_v10 }
 0x303   : > { %v1747_v14 = vmax.f32 %v1717_v5, 0.0  ;;  %v2920_v45 = vadd.f32 %v2919_v4, %v2918_v12 }
 0x304   : > { %v2921_v15 = vpop.f32.mrf.mxu1 }
 0x305   : > { %v1757_v16 = vpack.c.bf16 %v1747_v14, %v1746_v13  ;;  %v1722_v19 = vadd.f32 %v2920_v45, %v3708_v11  ;;  %v3246_v13 = vld [vmem:[%s4012_s7 + $0x30] sm:$0xff]   ;;  %v3247_v45 = vld [vmem:[%s4012_s7 + $0x68] sm:$0xff]  }
 0x306   : > { %v2922_v17 = vpop.f32.mrf.mxu1  ;;  %2949 = vmatpush3.bf16.msra.mxu1 %v3246_v13 }
 0x307   : > { %v2923_v20 = vadd.f32 %v2922_v17, %v2921_v15  ;;  %3067 = vmatmul.mubr.bf16.gmra.mxu0 %v1757_v16  ;;  %v1748_v25 = vmax.f32 %v1722_v19, 0.0  ;;  %v3248_v19 = vld [vmem:[%s4012_s7 + $0x28] sm:$0xff]   ;;  %2950 = vmatprep.subr.bf16.mxu1 %v3247_v45 }
 0x308   : > { %v2924_v22 = vpop.f32.mrf.mxu1 }
 0x309   : > { %v1725_v23 = vadd.f32 %v2923_v20, %v3708_v11 }
 0x30a   : > { %v2925_v24 = vpop.f32.mrf.mxu1  ;;  %2951 = vmatpush3.bf16.msra.mxu1 %v3248_v19 }
 0x30b   : > { %v1749_v26 = vmax.f32 %v1725_v23, 0.0  ;;  %v2926_v27 = vadd.f32 %v2925_v24, %v2924_v22  ;;  %v3249_v22 = vld [vmem:[%s4012_s7 + $0x60] sm:$0xff]  }
 0x30c   : > { %v2927_v28 = vpop.f32.mrf.mxu1  ;;  %2952 = vmatprep.subr.bf16.mxu1 %v3249_v22 }
 0x30d   : > { %v1758_v29 = vpack.c.bf16 %v1749_v26, %v1748_v25  ;;  %v1730_v31 = vadd.f32 %v2926_v27, %v3708_v11  ;;  %v3250_v26 = vld [vmem:[%s4012_s7 + $0x20] sm:$0xff]  }
 0x30e   : > { %v2928_v30 = vpop.f32.mrf.mxu1  ;;  %2953 = vmatpush3.bf16.msra.mxu1 %v3250_v26 }
 0x30f   : > { %v2929_v32 = vadd.f32 %v2928_v30, %v2927_v28  ;;  %3070 = vmatprep.mubr.bf16.mxu0 %v1758_v29  ;;  %v1750_v35 = vmax.f32 %v1730_v31, 0.0  ;;  %v3251_v28 = vld [vmem:[%s4012_s7 + $0x58] sm:$0xff]  }
 0x310   : > { %2954 = vmatprep.subr.bf16.mxu1 %v3251_v28 }
 0x311   : > { %v1733_v33 = vadd.f32 %v2929_v32, %v3708_v11  ;;  %v3222_v11 = vld [vmem:[%s4010_s5 + $0x60] ss:$8 sps:$4 sm:$0xff]   ;;  %v3252_v32 = vld [vmem:[%s4012_s7 + $0x18] sm:$0xff]  }
 0x312   : > { %2063 = vmatpush1.bf16.msra.mxu0 %v3222_v11  ;;  %2955 = vmatpush3.bf16.msra.mxu1 %v3252_v32  ;;  %v3255_v11 = vld [vmem:[%s4012_s7 + $0x48] sm:$0xff]  }
 0x313   : > { %v1751_v36 = vmax.f32 %v1733_v33, 0.0  ;;  %2064 = vmatprep.subr.bf16.mxu0 %v3227_v40  ;;  %2956 = vmatprep.subr.bf16.mxu1 %v3253_v34 }
 0x315   : > { %v1759_v38 = vpack.c.bf16 %v1751_v36, %v1750_v35 }
 0x316   : > { %2065 = vmatpush1.bf16.msra.mxu0 %v3225_v41 }
 0x317   : > { %3071 = vmatmul.mubr.bf16.gmra.mxu0 %v1759_v38  ;;  %2066 = vmatprep.subr.bf16.mxu0 %v3230_v42  ;;  %v3254_v38 = vld [vmem:[%s4012_s7 + $0x10] sm:$0xff]  }
 0x318   : > { %2092 = vmatprep.mubr.bf16.mxu0 %v3267_v18  ;;  %2957 = vmatpush3.bf16.msra.mxu1 %v3254_v38 }
 0x319   : > { %2958 = vmatprep.subr.bf16.mxu1 %v3255_v11 }
 0x31a   : > { %2067 = vmatpush1.bf16.msra.mxu0 %v3228_v43  ;;  %v3256_v43 = vld [vmem:[%s4012_s7 + $0x8] sm:$0xff]  }
 0x31b   : > { %2068 = vmatprep.subr.bf16.mxu0 %v3233_v21 }
 0x31c   : > { %2959 = vmatpush3.bf16.msra.mxu1 %v3256_v43 }
 0x31e   : > { %2069 = vmatpush1.bf16.msra.mxu0 %v3231_v44 }
 0x31f   : > { %2070 = vmatprep.subr.bf16.mxu0 %v3236_v46 }
 0x322   : > { %2071 = vmatpush1.bf16.msra.mxu0 %v3234_v47 }
 0x323   : > { %2072 = vmatprep.subr.bf16.mxu0 %v3239_v48 }
 0x326   : > { %2073 = vmatpush1.bf16.msra.mxu0 %v3237_v49 }
 0x327   : > { %2074 = vmatprep.subr.bf16.mxu0 %v3242_v50 }
 0x32a   : > { %2075 = vmatpush1.bf16.msra.mxu0 %v3240_v51 }
 0x35e   : > { %v2818_v52 = vpop.f32.mrf.mxu0 }
 0x360   : > { %v2819_v54 = vpop.f32.mrf.mxu0 }
 0x361   : > { %v2820_v55 = vadd.f32 %v2819_v54, %v2818_v52 }
 0x362   : > { %v2821_v56 = vpop.f32.mrf.mxu0 }
 0x363   : > { %v1326_v57 = vadd.f32 %v2820_v55, %v3778_v53 }
 0x364   : > { %v2822_v58 = vpop.f32.mrf.mxu0 }
 0x365   : > { %1389 = vst.msk [vmem:[%s3785_s29] sm:$0xff] %vm1388_vm0, %v1326_v57  ;;  %v2823_v59 = vadd.f32 %v2822_v58, %v2821_v56 }
 0x366   : > { %v2824_v60 = vpop.f32.mrf.mxu0 }
 0x367   : > { %v1329_v61 = vadd.f32 %v2823_v59, %v3778_v53 }
 0x368   : > { %v2825_v62 = vpop.f32.mrf.mxu0 }
 0x369   : > { %1390 = vst.msk [vmem:[%s3785_s29 + $0x8] sm:$0xff] %vm1388_vm0, %v1329_v61  ;;  %v2826_v2 = vadd.f32 %v2825_v62, %v2824_v60 }
 0x36a   : > { %v2827_v3 = vpop.f32.mrf.mxu0 }
 0x36b   : > { %v1334_v6 = vadd.f32 %v2826_v2, %v3778_v53 }
 0x36c   : > { %v2828_v7 = vpop.f32.mrf.mxu0 }
 0x36d   : > { %1391 = vst.msk [vmem:[%s3785_s29 + $0x10] sm:$0xff] %vm1388_vm0, %v1334_v6  ;;  %v2829_v12 = vadd.f32 %v2828_v7, %v2827_v3 }
 0x36e   : > { %v2830_v5 = vpop.f32.mrf.mxu0 }
 0x36f   : > { %v1337_v4 = vadd.f32 %v2829_v12, %v3778_v53 }
 0x370   : > { %v2831_v14 = vpop.f32.mrf.mxu0 }
 0x371   : > { %1392 = vst.msk [vmem:[%s3785_s29 + $0x18] sm:$0xff] %vm1388_vm0, %v1337_v4  ;;  %v2832_v15 = vadd.f32 %v2831_v14, %v2830_v5  ;;  %v3880_v14 = vld [vmem:[%s4009_s4] ss:$0 sm:$0xff] }
 0x372   : > { %v2833_v16 = vpop.f32.mrf.mxu0 }
 0x373   : > { %v1342_v17 = vadd.f32 %v2832_v15, %v3778_v53 }
 0x374   : > { %v2834_v20 = vpop.f32.mrf.mxu0 }
 0x375   : > { %1393 = vst.msk [vmem:[%s3785_s29 + $0x20] sm:$0xff] %vm1388_vm0, %v1342_v17  ;;  %v2835_v23 = vadd.f32 %v2834_v20, %v2833_v16 }
 0x376   : > { %v2836_v24 = vpop.f32.mrf.mxu0 }
 0x377   : > { %v1345_v25 = vadd.f32 %v2835_v23, %v3778_v53 }
 0x378   : > { %v2837_v27 = vpop.f32.mrf.mxu0 }
 0x379   : > { %1394 = vst.msk [vmem:[%s3785_s29 + $0x28] sm:$0xff] %vm1388_vm0, %v1345_v25  ;;  %v2838_v29 = vadd.f32 %v2837_v27, %v2836_v24 }
 0x37a   : > { %v2839_v30 = vpop.f32.mrf.mxu0 }
 0x37b   : > { %v1350_v31 = vadd.f32 %v2838_v29, %v3778_v53 }
 0x37c   : > { %v2840_v33 = vpop.f32.mrf.mxu0 }
 0x37d   : > { %1395 = vst.msk [vmem:[%s3785_s29 + $0x30] sm:$0xff] %vm1388_vm0, %v1350_v31  ;;  %v2841_v35 = vadd.f32 %v2840_v33, %v2839_v30 }
 0x37e   : > { %v2842_v36 = vpop.f32.mrf.mxu0 }
 0x37f   : > { %v1353_v37 = vadd.f32 %v2841_v35, %v3778_v53 }
 0x380   : > { %v2843_v39 = vpop.f32.mrf.mxu0 }
 0x381   : > { %1396 = vst.msk [vmem:[%s3785_s29 + $0x38] sm:$0xff] %vm1388_vm0, %v1353_v37  ;;  %v2844_v40 = vadd.f32 %v2843_v39, %v2842_v36 }
 0x382   : > { %v2845_v41 = vpop.f32.mrf.mxu0 }
 0x383   : > { %v1358_v42 = vadd.f32 %v2844_v40, %v3778_v53 }
 0x384   : > { %v2846_v44 = vpop.f32.mrf.mxu0 }
 0x385   : > { %1397 = vst.msk [vmem:[%s3785_s29 + $0x40] sm:$0xff] %vm1388_vm0, %v1358_v42  ;;  %v2847_v21 = vadd.f32 %v2846_v44, %v2845_v41 }
 0x386   : > { %v2848_v46 = vpop.f32.mrf.mxu0 }
 0x387   : > { %v1361_v47 = vadd.f32 %v2847_v21, %v3778_v53 }
 0x388   : > { %v2849_v48 = vpop.f32.mrf.mxu0 }
 0x389   : > { %1398 = vst.msk [vmem:[%s3785_s29 + $0x48] sm:$0xff] %vm1388_vm0, %v1361_v47  ;;  %v2850_v49 = vadd.f32 %v2849_v48, %v2848_v46 }
 0x38a   : > { %v2851_v50 = vpop.f32.mrf.mxu0 }
 0x38b   : > { %v1366_v51 = vadd.f32 %v2850_v49, %v3778_v53 }
 0x38c   : > { %v2852_v52 = vpop.f32.mrf.mxu0 }
 0x38d   : > { %1399 = vst.msk [vmem:[%s3785_s29 + $0x50] sm:$0xff] %vm1388_vm0, %v1366_v51  ;;  %v2853_v54 = vadd.f32 %v2852_v52, %v2851_v50 }
 0x38e   : > { %v2854_v55 = vpop.f32.mrf.mxu0 }
 0x38f   : > { %v1369_v56 = vadd.f32 %v2853_v54, %v3778_v53 }
 0x390   : > { %v2855_v57 = vpop.f32.mrf.mxu0 }
 0x391   : > { %1400 = vst.msk [vmem:[%s3785_s29 + $0x58] sm:$0xff] %vm1388_vm0, %v1369_v56  ;;  %v2856_v58 = vadd.f32 %v2855_v57, %v2854_v55 }
 0x392   : > { %v2857_v59 = vpop.f32.mrf.mxu0 }
 0x393   : > { %v1374_v60 = vadd.f32 %v2856_v58, %v3778_v53 }
 0x394   : > { %v2858_v61 = vpop.f32.mrf.mxu0 }
 0x395   : > { %1401 = vst.msk [vmem:[%s3785_s29 + $0x60] sm:$0xff] %vm1388_vm0, %v1374_v60  ;;  %v2859_v62 = vadd.f32 %v2858_v61, %v2857_v59 }
 0x396   : > { %v2860_v2 = vpop.f32.mrf.mxu0 }
 0x397   : > { %v1377_v3 = vadd.f32 %v2859_v62, %v3778_v53 }
 0x398   : > { %v2861_v6 = vpop.f32.mrf.mxu0 }
 0x399   : > { %1402 = vst.msk [vmem:[%s3785_s29 + $0x68] sm:$0xff] %vm1388_vm0, %v1377_v3  ;;  %v2862_v7 = vadd.f32 %v2861_v6, %v2860_v2 }
 0x39a   : > { %v2863_v8 = vpop.f32.mrf.mxu0 }
 0x39b   : > { %v1382_v9 = vadd.f32 %v2862_v7, %v3778_v53 }
 0x39c   : > { %v2864_v10 = vpop.f32.mrf.mxu0 }
 0x39d   : > { %1403 = vst.msk [vmem:[%s3785_s29 + $0x70] sm:$0xff] %vm1388_vm0, %v1382_v9  ;;  %v2865_v12 = vadd.f32 %v2864_v10, %v2863_v8 }
 0x39f   : > { %v1385_v5 = vadd.f32 %v2865_v12, %v3778_v53  ;;  %v3257_v12 = vld [vmem:[%s4012_s7 + $0x40] sm:$0xff]  }
 0x3a0   : > { %2960 = vmatprep.subr.bf16.mxu1 %v3257_v12 }
 0x3a1   : > { %1404 = vst.msk [vmem:[%s3785_s29 + $0x78] sm:$0xff] %vm1388_vm0, %v1385_v5  ;;  %v3258_v5 = vld [vmem:[%s4012_s7] sm:$0xff]  }
 0x3a2   : > { %2961 = vmatpush3.bf16.msra.mxu1 %v3258_v5 }
 0x3a7   : > { %v3060_v4 = vpop.f32.mrf.mxu0 }
 0x3a8   : > { %v1874_v24 = vadd.f32 %v3060_v4, %v3880_v14  ;;  %v1968_v4 = vld [vmem:[%s4011_s6] sm:$0x3] }
 0x3a9   : > { %v1865_v13 = vpop.f32.mrf.mxu0 }
 0x3aa   : > { %v1866_v15 = vadd.f32 %v3880_v14, %v1865_v13  ;;  %v1930_v27 = vmax.f32 %v1874_v24, 0.0 }
 0x3ab   : > { %v3061_v45 = vpop.f32.mrf.mxu0 }
 0x3ac   : > { %v1928_v19 = vmax.f32 %v1866_v15, 0.0  ;;  %v1877_v22 = vadd.f32 %v3061_v45, %v3880_v14 }
 0x3ad   : > { %v1868_v16 = vpop.f32.mrf.mxu0 }
 0x3ae   : > { %v1869_v17 = vadd.f32 %v3880_v14, %v1868_v16  ;;  %v1931_v25 = vmax.f32 %v1877_v22, 0.0 }
 0x3b0   : > { %v1929_v20 = vmax.f32 %v1869_v17, 0.0  ;;  %v1945_v29 = vpack.c.bf16 %v1931_v25, %v1930_v27 }
 0x3b2   : > { %v1944_v23 = vpack.c.bf16 %v1929_v20, %v1928_v19 }
 0x3b4   : > { %2093 = vmatmul.mubr.bf16.vlgmr.msra.gmra.mxu0 %v1944_v23 }
 0x3b5   : > { %2102 = vmatprep.mubr.bf16.mxu0 %v3267_v18 }
 0x3b7   : > { %v3064_v26 = vpop.f32.mrf.mxu0 }
 0x3b8   : > { %v1890_v38 = vadd.f32 %v3064_v26, %v3880_v14 }
 0x3b9   : > { %v1881_v28 = vpop.f32.mrf.mxu0 }
 0x3ba   : > { %v1882_v31 = vadd.f32 %v3880_v14, %v1881_v28  ;;  %v1934_v40 = vmax.f32 %v1890_v38, 0.0 }
 0x3bb   : > { %v3065_v30 = vpop.f32.mrf.mxu0 }
 0x3bc   : > { %2103 = vmatmul.mubr.bf16.gmra.mxu0 %v1945_v29  ;;  %v1932_v34 = vmax.f32 %v1882_v31, 0.0  ;;  %v1893_v36 = vadd.f32 %v3065_v30, %v3880_v14 }
 0x3bd   : > { %v1884_v32 = vpop.f32.mrf.mxu0  ;;  %2112 = vmatprep.mubr.bf16.mxu0 %v3267_v18 }
 0x3be   : > { %v1885_v33 = vadd.f32 %v3880_v14, %v1884_v32  ;;  %v1935_v39 = vmax.f32 %v1893_v36, 0.0 }
 0x3c0   : > { %v1933_v35 = vmax.f32 %v1885_v33, 0.0  ;;  %v1947_v42 = vpack.c.bf16 %v1935_v39, %v1934_v40 }
 0x3c2   : > { %v1946_v37 = vpack.c.bf16 %v1933_v35, %v1932_v34 }
 0x3c4   : > { %2113 = vmatmul.mubr.bf16.gmra.mxu0 %v1946_v37 }
 0x3c5   : > { %2122 = vmatprep.mubr.bf16.mxu0 %v3267_v18 }
 0x3c7   : > { %v3068_v11 = vpop.f32.mrf.mxu0 }
 0x3c8   : > { %v1906_v51 = vadd.f32 %v3068_v11, %v3880_v14 }
 0x3c9   : > { %v1897_v41 = vpop.f32.mrf.mxu0 }
 0x3ca   : > { %v1898_v44 = vadd.f32 %v3880_v14, %v1897_v41  ;;  %v1938_v55 = vmax.f32 %v1906_v51, 0.0 }
 0x3cb   : > { %v3069_v43 = vpop.f32.mrf.mxu0 }
 0x3cc   : > { %2123 = vmatmul.mubr.bf16.gmra.mxu0 %v1947_v42  ;;  %v1936_v47 = vmax.f32 %v1898_v44, 0.0  ;;  %v1909_v49 = vadd.f32 %v3069_v43, %v3880_v14 }
 0x3cd   : > { %v1900_v21 = vpop.f32.mrf.mxu0  ;;  %2132 = vmatprep.mubr.bf16.mxu0 %v3267_v18 }
 0x3ce   : > { %v1901_v46 = vadd.f32 %v3880_v14, %v1900_v21  ;;  %v1939_v52 = vmax.f32 %v1909_v49, 0.0 }
 0x3d0   : > { %v1937_v48 = vmax.f32 %v1901_v46, 0.0  ;;  %v1949_v57 = vpack.c.bf16 %v1939_v52, %v1938_v55 }
 0x3d2   : > { %v1948_v50 = vpack.c.bf16 %v1937_v48, %v1936_v47 }
 0x3d4   : > { %2133 = vmatmul.mubr.bf16.gmra.mxu0 %v1948_v50 }
 0x3d5   : > { %2142 = vmatprep.mubr.bf16.mxu0 %v3267_v18 }
 0x3d7   : > { %v3072_v54 = vpop.f32.mrf.mxu0 }
 0x3d8   : > { %v1922_v7 = vadd.f32 %v3072_v54, %v3880_v14 }
 0x3d9   : > { %v1913_v56 = vpop.f32.mrf.mxu0 }
 0x3da   : > { %v1914_v59 = vadd.f32 %v3880_v14, %v1913_v56  ;;  %v1942_v9 = vmax.f32 %v1922_v7, 0.0 }
 0x3db   : > { %v3073_v58 = vpop.f32.mrf.mxu0 }
 0x3dc   : > { %2143 = vmatmul.mubr.bf16.gmra.mxu0 %v1949_v57  ;;  %v1940_v62 = vmax.f32 %v1914_v59, 0.0  ;;  %v1925_v3 = vadd.f32 %v3073_v58, %v3880_v14 }
 0x3dd   : > { %v1916_v60 = vpop.f32.mrf.mxu0  ;;  %2152 = vmatprep.mubr.bf16.mxu0 %v3267_v18 }
 0x3de   : > { %v1917_v61 = vadd.f32 %v3880_v14, %v1916_v60  ;;  %v1943_v8 = vmax.f32 %v1925_v3, 0.0  ;;  %v3920_v14 = vrot.slane %v1968_v4, %v907_v1 }
 0x3e0   : > { %v1941_v2 = vmax.f32 %v1917_v61, 0.0  ;;  %v1951_v10 = vpack.c.bf16 %v1943_v8, %v1942_v9 }
 0x3e2   : > { %v1950_v6 = vpack.c.bf16 %v1941_v2, %v1940_v62 }
 0x3e4   : > { %2153 = vmatmul.mubr.bf16.gmra.mxu0 %v1950_v6 }
 0x3e5   : > { %2162 = vmatprep.mubr.bf16.mxu0 %v3267_v18  ;;  %v3916_v18 = vrot.slane %v1968_v4, %v911_v0 }
 0x3ec   : > { %2163 = vmatmul.mubr.bf16.gmra.mxu0 %v1951_v10 }
 0x474   : > { %v2094_v13 = vpop.f32.mrf.mxu0 }
 0x475   : > { %v2095_v19 = vadd.f32 %v2094_v13, %v3920_v14 }
 0x476   : > { %v2096_v45 = vpop.f32.mrf.mxu0 }
 0x477   : > { %v2097_v16 = vadd.f32 %v2096_v45, %v3916_v18  ;;  %v2173_v26 = vmax.f32 %v2095_v19, 0.0 }
 0x478   : > { %v2098_v15 = vpop.f32.mrf.mxu0 }
 0x479   : > { %v2099_v17 = vadd.f32 %v2098_v15, %v3920_v14  ;;  %v2174_v25 = vmax.f32 %v2097_v16, 0.0 }
 0x47a   : > { %v2100_v20 = vpop.f32.mrf.mxu0 }
 0x47b   : > { %v2101_v22 = vadd.f32 %v2100_v20, %v3916_v18  ;;  %v2175_v23 = vmax.f32 %v2099_v17, 0.0 }
 0x47c   : > { %v2104_v24 = vpop.f32.mrf.mxu0 }
 0x47d   : > { %v2176_v0 = vmax.f32 %v2101_v22, 0.0  ;;  %v2205_v1 = vpack.c.bf16 %v2175_v23, %v2173_v26  ;;  %v2105_v31 = vadd.f32 %v2104_v24, %v3920_v14 }
 0x47e   : > { %v2106_v27 = vpop.f32.mrf.mxu0 }
 0x47f   : > { %v2206_v63 = vpack.c.bf16 %v2176_v0, %v2174_v25  ;;  %v2107_v29 = vadd.f32 %v2106_v27, %v3916_v18  ;;  %v2177_v38 = vmax.f32 %v2105_v31, 0.0 }
 0x480   : > { %v2108_v28 = vpop.f32.mrf.mxu0 }
 0x481   : > { %v2109_v30 = vadd.f32 %v2108_v28, %v3920_v14  ;;  %2388 = vmatprep.mubr.bf16.mxu1 %v2206_v63  ;;  %v2178_v36 = vmax.f32 %v2107_v29, 0.0 }
 0x482   : > { %v2110_v32 = vpop.f32.mrf.mxu0  ;;  %2389 = vmatmul.mubr.bf16.vlgmr.msra.gmra.mxu1 %v2205_v1 }
 0x483   : > { %v2111_v33 = vadd.f32 %v2110_v32, %v3916_v18  ;;  %v2179_v34 = vmax.f32 %v2109_v30, 0.0 }
 0x484   : > { %v2114_v35 = vpop.f32.mrf.mxu0 }
 0x485   : > { %v2180_v37 = vmax.f32 %v2111_v33, 0.0  ;;  %v2207_v40 = vpack.c.bf16 %v2179_v34, %v2177_v38  ;;  %v2115_v44 = vadd.f32 %v2114_v35, %v3920_v14 }
 0x486   : > { %v2116_v39 = vpop.f32.mrf.mxu0 }
 0x487   : > { %v2208_v11 = vpack.c.bf16 %v2180_v37, %v2178_v36  ;;  %v2117_v42 = vadd.f32 %v2116_v39, %v3916_v18  ;;  %v2181_v51 = vmax.f32 %v2115_v44, 0.0 }
 0x488   : > { %v2118_v41 = vpop.f32.mrf.mxu0 }
 0x489   : > { %v2119_v43 = vadd.f32 %v2118_v41, %v3920_v14  ;;  %2396 = vmatprep.mubr.bf16.mxu1 %v2208_v11  ;;  %v2182_v49 = vmax.f32 %v2117_v42, 0.0 }
 0x48a   : > { %v2120_v21 = vpop.f32.mrf.mxu0  ;;  %2397 = vmatmul.mubr.bf16.gmra.mxu1 %v2207_v40 }
 0x48b   : > { %v2121_v46 = vadd.f32 %v2120_v21, %v3916_v18  ;;  %v2183_v47 = vmax.f32 %v2119_v43, 0.0 }
 0x48c   : > { %v2124_v48 = vpop.f32.mrf.mxu0 }
 0x48d   : > { %v2184_v50 = vmax.f32 %v2121_v46, 0.0  ;;  %v2209_v55 = vpack.c.bf16 %v2183_v47, %v2181_v51  ;;  %v2125_v59 = vadd.f32 %v2124_v48, %v3920_v14 }
 0x48e   : > { %v2126_v52 = vpop.f32.mrf.mxu0 }
 0x48f   : > { %v2210_v54 = vpack.c.bf16 %v2184_v50, %v2182_v49  ;;  %v2127_v57 = vadd.f32 %v2126_v52, %v3916_v18  ;;  %v2185_v7 = vmax.f32 %v2125_v59, 0.0 }
 0x490   : > { %v2128_v56 = vpop.f32.mrf.mxu0 }
 0x491   : > { %v2129_v58 = vadd.f32 %v2128_v56, %v3920_v14  ;;  %2404 = vmatprep.mubr.bf16.mxu1 %v2210_v54  ;;  %v2186_v3 = vmax.f32 %v2127_v57, 0.0 }
 0x492   : > { %v2130_v60 = vpop.f32.mrf.mxu0  ;;  %2405 = vmatmul.mubr.bf16.gmra.mxu1 %v2209_v55 }
 0x493   : > { %v2131_v61 = vadd.f32 %v2130_v60, %v3916_v18  ;;  %v2187_v62 = vmax.f32 %v2129_v58, 0.0 }
 0x494   : > { %v2134_v2 = vpop.f32.mrf.mxu0 }
 0x495   : > { %v2188_v6 = vmax.f32 %v2131_v61, 0.0  ;;  %v2211_v10 = vpack.c.bf16 %v2187_v62, %v2185_v7  ;;  %v2135_v13 = vadd.f32 %v2134_v2, %v3920_v14 }
 0x496   : > { %v2136_v8 = vpop.f32.mrf.mxu0 }
 0x497   : > { %v2212_v9 = vpack.c.bf16 %v2188_v6, %v2186_v3  ;;  %v2137_v5 = vadd.f32 %v2136_v8, %v3916_v18  ;;  %v2189_v22 = vmax.f32 %v2135_v13, 0.0 }
 0x498   : > { %v2138_v12 = vpop.f32.mrf.mxu0 }
 0x499   : > { %v2139_v4 = vadd.f32 %v2138_v12, %v3920_v14  ;;  %2412 = vmatprep.mubr.bf16.mxu1 %v2212_v9  ;;  %v2190_v19 = vmax.f32 %v2137_v5, 0.0 }
 0x49a   : > { %v2140_v45 = vpop.f32.mrf.mxu0  ;;  %2413 = vmatmul.mubr.bf16.gmra.mxu1 %v2211_v10 }
 0x49b   : > { %v2141_v15 = vadd.f32 %v2140_v45, %v3916_v18  ;;  %v2191_v16 = vmax.f32 %v2139_v4, 0.0 }
 0x49c   : > { %v2144_v17 = vpop.f32.mrf.mxu0 }
 0x49d   : > { %v2192_v20 = vmax.f32 %v2141_v15, 0.0  ;;  %v2213_v25 = vpack.c.bf16 %v2191_v16, %v2189_v22  ;;  %v2145_v63 = vadd.f32 %v2144_v17, %v3920_v14 }
 0x49e   : > { %v2146_v23 = vpop.f32.mrf.mxu0 }
 0x49f   : > { %v2214_v24 = vpack.c.bf16 %v2192_v20, %v2190_v19  ;;  %v2147_v26 = vadd.f32 %v2146_v23, %v3916_v18  ;;  %v2193_v33 = vmax.f32 %v2145_v63, 0.0 }
 0x4a0   : > { %v2148_v0 = vpop.f32.mrf.mxu0 }
 0x4a1   : > { %v2149_v27 = vadd.f32 %v2148_v0, %v3920_v14  ;;  %2420 = vmatprep.mubr.bf16.mxu1 %v2214_v24  ;;  %v2194_v31 = vmax.f32 %v2147_v26, 0.0 }
 0x4a2   : > { %v2150_v1 = vpop.f32.mrf.mxu0  ;;  %2421 = vmatmul.mubr.bf16.gmra.mxu1 %v2213_v25 }
 0x4a3   : > { %v2151_v28 = vadd.f32 %v2150_v1, %v3916_v18  ;;  %v2195_v29 = vmax.f32 %v2149_v27, 0.0 }
 0x4a4   : > { %v2154_v30 = vpop.f32.mrf.mxu0 }
 0x4a5   : > { %v2196_v32 = vmax.f32 %v2151_v28, 0.0  ;;  %v2215_v36 = vpack.c.bf16 %v2195_v29, %v2193_v33  ;;  %v2155_v11 = vadd.f32 %v2154_v30, %v3920_v14 }
 0x4a6   : > { %v2156_v34 = vpop.f32.mrf.mxu0 }
 0x4a7   : > { %v2216_v35 = vpack.c.bf16 %v2196_v32, %v2194_v31  ;;  %v2157_v38 = vadd.f32 %v2156_v34, %v3916_v18  ;;  %v2197_v46 = vmax.f32 %v2155_v11, 0.0 }
 0x4a8   : > { %v2158_v37 = vpop.f32.mrf.mxu0 }
 0x4a9   : > { %v2159_v39 = vadd.f32 %v2158_v37, %v3920_v14  ;;  %2428 = vmatprep.mubr.bf16.mxu1 %v2216_v35  ;;  %v2198_v44 = vmax.f32 %v2157_v38, 0.0 }
 0x4aa   : > { %v2160_v40 = vpop.f32.mrf.mxu0  ;;  %2429 = vmatmul.mubr.bf16.gmra.mxu1 %v2215_v36 }
 0x4ab   : > { %v2161_v41 = vadd.f32 %v2160_v40, %v3916_v18  ;;  %v2199_v42 = vmax.f32 %v2159_v39, 0.0 }
 0x4ac   : > { %v2164_v43 = vpop.f32.mrf.mxu0 }
 0x4ad   : > { %v2200_v21 = vmax.f32 %v2161_v41, 0.0  ;;  %v2217_v49 = vpack.c.bf16 %v2199_v42, %v2197_v46  ;;  %v2165_v54 = vadd.f32 %v2164_v43, %v3920_v14 }
 0x4ae   : > { %v2166_v47 = vpop.f32.mrf.mxu0 }
 0x4af   : > { %v2218_v48 = vpack.c.bf16 %v2200_v21, %v2198_v44  ;;  %v2167_v51 = vadd.f32 %v2166_v47, %v3916_v18  ;;  %v2201_v60 = vmax.f32 %v2165_v54, 0.0 }
 0x4b0   : > { %v2168_v50 = vpop.f32.mrf.mxu0 }
 0x4b1   : > { %v2169_v52 = vadd.f32 %v2168_v50, %v3920_v14  ;;  %2436 = vmatprep.mubr.bf16.mxu1 %v2218_v48  ;;  %v2202_v58 = vmax.f32 %v2167_v51, 0.0 }
 0x4b2   : > { %v2170_v55 = vpop.f32.mrf.mxu0  ;;  %2437 = vmatmul.mubr.bf16.gmra.mxu1 %v2217_v49 }
 0x4b3   : > { %v2171_v56 = vadd.f32 %v2170_v55, %v3916_v18  ;;  %v2203_v57 = vmax.f32 %v2169_v52, 0.0 }
 0x4b5   : > { %v2204_v59 = vmax.f32 %v2171_v56, 0.0  ;;  %v2219_v62 = vpack.c.bf16 %v2203_v57, %v2201_v60 }
 0x4b7   : > { %v2220_v61 = vpack.c.bf16 %v2204_v59, %v2202_v58 }
 0x4b9   : > { %2444 = vmatprep.mubr.bf16.mxu1 %v2220_v61 }
 0x4ba   : > { %2445 = vmatmul.mubr.bf16.gmra.mxu1 %v2219_v62 }
 0x542   : > { %v2962_v2 = vpop.f32.mrf.mxu1 }
 0x544   : > { %v2963_v3 = vpop.f32.mrf.mxu1 }
 0x545   : > { %v2964_v6 = vadd.f32 %v2963_v3, %v2962_v2 }
 0x546   : > { %v2965_v7 = vpop.f32.mrf.mxu1 }
 0x547   : > { %v2391_v14 = vadd.f32 %v2964_v6, %v3778_v53 }
 0x548   : > { %v2966_v8 = vpop.f32.mrf.mxu1 }
 0x549   : > { %2703 = vst.msk [vmem:[%s3785_s29 + $0x80] sm:$0xff] %vm1388_vm0, %v2391_v14  ;;  %v2967_v18 = vadd.f32 %v2966_v8, %v2965_v7 }
 0x54a   : > { %v2968_v9 = vpop.f32.mrf.mxu1 }
 0x54b   : > { %v2394_v10 = vadd.f32 %v2967_v18, %v3778_v53 }
 0x54c   : > { %v2969_v12 = vpop.f32.mrf.mxu1 }
 0x54d   : > { %2704 = vst.msk [vmem:[%s3785_s29 + $0x88] sm:$0xff] %vm1388_vm0, %v2394_v10  ;;  %v2970_v5 = vadd.f32 %v2969_v12, %v2968_v9 }
 0x54e   : > { %v2971_v4 = vpop.f32.mrf.mxu1 }
 0x54f   : > { %v2399_v13 = vadd.f32 %v2970_v5, %v3778_v53 }
 0x550   : > { %v2972_v45 = vpop.f32.mrf.mxu1 }
 0x551   : > { %2705 = vst.msk [vmem:[%s3785_s29 + $0x90] sm:$0xff] %vm1388_vm0, %v2399_v13  ;;  %v2973_v15 = vadd.f32 %v2972_v45, %v2971_v4 }
 0x552   : > { %v2974_v16 = vpop.f32.mrf.mxu1 }
 0x553   : > { %v2402_v17 = vadd.f32 %v2973_v15, %v3778_v53 }
 0x554   : > { %v2975_v19 = vpop.f32.mrf.mxu1 }
 0x555   : > { %2706 = vst.msk [vmem:[%s3785_s29 + $0x98] sm:$0xff] %vm1388_vm0, %v2402_v17  ;;  %v2976_v20 = vadd.f32 %v2975_v19, %v2974_v16 }
 0x556   : > { %v2977_v22 = vpop.f32.mrf.mxu1 }
 0x557   : > { %v2407_v23 = vadd.f32 %v2976_v20, %v3778_v53 }
 0x558   : > { %v2978_v24 = vpop.f32.mrf.mxu1 }
 0x559   : > { %2707 = vst.msk [vmem:[%s3785_s29 + $0xa0] sm:$0xff] %vm1388_vm0, %v2407_v23  ;;  %v2979_v25 = vadd.f32 %v2978_v24, %v2977_v22 }
 0x55a   : > { %v2980_v0 = vpop.f32.mrf.mxu1 }
 0x55b   : > { %v2410_v26 = vadd.f32 %v2979_v25, %v3778_v53 }
 0x55c   : > { %v2981_v27 = vpop.f32.mrf.mxu1 }
 0x55d   : > { %2708 = vst.msk [vmem:[%s3785_s29 + $0xa8] sm:$0xff] %vm1388_vm0, %v2410_v26  ;;  %v2982_v63 = vadd.f32 %v2981_v27, %v2980_v0 }
 0x55e   : > { %v2983_v1 = vpop.f32.mrf.mxu1 }
 0x55f   : > { %v2415_v28 = vadd.f32 %v2982_v63, %v3778_v53 }
 0x560   : > { %v2984_v29 = vpop.f32.mrf.mxu1 }
 0x561   : > { %2709 = vst.msk [vmem:[%s3785_s29 + $0xb0] sm:$0xff] %vm1388_vm0, %v2415_v28  ;;  %v2985_v30 = vadd.f32 %v2984_v29, %v2983_v1 }
 0x562   : > { %v2986_v31 = vpop.f32.mrf.mxu1 }
 0x563   : > { %v2418_v32 = vadd.f32 %v2985_v30, %v3778_v53 }
 0x564   : > { %v2987_v33 = vpop.f32.mrf.mxu1 }
 0x565   : > { %2710 = vst.msk [vmem:[%s3785_s29 + $0xb8] sm:$0xff] %vm1388_vm0, %v2418_v32  ;;  %v2988_v34 = vadd.f32 %v2987_v33, %v2986_v31 }
 0x566   : > { %v2989_v35 = vpop.f32.mrf.mxu1 }
 0x567   : > { %v2423_v36 = vadd.f32 %v2988_v34, %v3778_v53 }
 0x568   : > { %v2990_v37 = vpop.f32.mrf.mxu1 }
 0x569   : > { %2711 = vst.msk [vmem:[%s3785_s29 + $0xc0] sm:$0xff] %vm1388_vm0, %v2423_v36  ;;  %v2991_v38 = vadd.f32 %v2990_v37, %v2989_v35 }
 0x56a   : > { %v2992_v39 = vpop.f32.mrf.mxu1 }
 0x56b   : > { %v2426_v11 = vadd.f32 %v2991_v38, %v3778_v53 }
 0x56c   : > { %v2993_v40 = vpop.f32.mrf.mxu1 }
 0x56d   : > { %2712 = vst.msk [vmem:[%s3785_s29 + $0xc8] sm:$0xff] %vm1388_vm0, %v2426_v11  ;;  %v2994_v41 = vadd.f32 %v2993_v40, %v2992_v39 }
 0x56e   : > { %v2995_v42 = vpop.f32.mrf.mxu1 }
 0x56f   : > { %v2431_v43 = vadd.f32 %v2994_v41, %v3778_v53 }
 0x570   : > { %v2996_v44 = vpop.f32.mrf.mxu1 }
 0x571   : > { %2713 = vst.msk [vmem:[%s3785_s29 + $0xd0] sm:$0xff] %vm1388_vm0, %v2431_v43  ;;  %v2997_v21 = vadd.f32 %v2996_v44, %v2995_v42 }
 0x572   : > { %v2998_v46 = vpop.f32.mrf.mxu1 }
 0x573   : > { %v2434_v47 = vadd.f32 %v2997_v21, %v3778_v53 }
 0x574   : > { %v2999_v48 = vpop.f32.mrf.mxu1 }
 0x575   : > { %2714 = vst.msk [vmem:[%s3785_s29 + $0xd8] sm:$0xff] %vm1388_vm0, %v2434_v47  ;;  %v3000_v49 = vadd.f32 %v2999_v48, %v2998_v46 }
 0x576   : > { %v3001_v50 = vpop.f32.mrf.mxu1 }
 0x577   : > { %v2439_v51 = vadd.f32 %v3000_v49, %v3778_v53 }
 0x578   : > { %v3002_v52 = vpop.f32.mrf.mxu1 }
 0x579   : > { %2715 = vst.msk [vmem:[%s3785_s29 + $0xe0] sm:$0xff] %vm1388_vm0, %v2439_v51  ;;  %v3003_v54 = vadd.f32 %v3002_v52, %v3001_v50 }
 0x57a   : > { %v3004_v55 = vpop.f32.mrf.mxu1 }
 0x57b   : > { %v2442_v56 = vadd.f32 %v3003_v54, %v3778_v53 }
 0x57c   : > { %v3005_v57 = vpop.f32.mrf.mxu1 }
 0x57d   : > { %2716 = vst.msk [vmem:[%s3785_s29 + $0xe8] sm:$0xff] %vm1388_vm0, %v2442_v56  ;;  %v3006_v58 = vadd.f32 %v3005_v57, %v3004_v55 }
 0x57e   : > { %v3007_v59 = vpop.f32.mrf.mxu1 }
 0x57f   : > { %v2447_v60 = vadd.f32 %v3006_v58, %v3778_v53 }
 0x580   : > { %v3008_v61 = vpop.f32.mrf.mxu1 }
 0x581   : > { %2717 = vst.msk [vmem:[%s3785_s29 + $0xf0] sm:$0xff] %vm1388_vm0, %v2447_v60  ;;  %v3009_v62 = vadd.f32 %v3008_v61, %v3007_v59 }
 0x583   : > { %v2450_v2 = vadd.f32 %v3009_v62, %v3778_v53 }
 0x585   : > { %2718 = vst.msk [vmem:[%s3785_s29 + $0xf8] sm:$0xff] %vm1388_vm0, %v2450_v2 }
 0x586 PF: > { %s19_s30 = sadd.s32 1, %s3265_s30  }
 0x587   : > { %p16_p4 = scmp.ge.s32.totalorder %s19_s30, 4  }
 0x589   :  { %18 = sbr.rel (!%p16_p4) target bundleno = 1 (0x1), region = 89 }

</bundles_post_ra>
